<compile_context>
chip_gen: v5e
topology: v5e:2x2
jax: 0.10.0
libtpu: 0.0.40
codegen_flags: <defaults>
</compile_context>

<pallas_src>
import jax
import jax.numpy as jnp
from jax import lax
from jax.experimental import pallas as pl
from jax.experimental.pallas import tpu as pltpu

EPS = 1e-12
POWER_ITERATIONS = 2


# --------------------------------------------------------------------------
# Wrapper: minimal layout plumbing + a single pallas_call (grid = (1,)).
# --------------------------------------------------------------------------
def spectral_norm_conv_forward(x_nchw, weight_oihw, bias, u0):
    """Forward of SpectralNorm(Conv2d(CIN, COUT, 3, stride=1, padding=1))."""
    n, cin, h, w = x_nchw.shape
    cout, _, kh, kw = weight_oihw.shape
    pad = (kh - 1) // 2

    # _w = permute(weight, [2,3,1,0]).reshape(-1, COUT): rows ordered (kh, kw, cin).
    # (288-element tensor; this prep is negligible and mirrors the module exactly.)
    w2d = jnp.transpose(weight_oihw, (2, 3, 1, 0)).reshape(kh * kw * cin, cout)
    r, c = w2d.shape
    assert r > c, "this implements the 'right' singular-vector branch (rows > cols)"
    wT = w2d.T.astype(jnp.float32)                     # (C, R): the only weight operand

    # Activations: zero-pad spatially (+1 guard row at the bottom so the widest
    # tap's flat slice stays in bounds) and collapse (Hp, Wp) -> flat lanes.
    # Tap (dh, dw) then corresponds to a *contiguous* flat slice at offset
    # dh*Wp + dw, so patch extraction becomes static slicing inside the kernel.
    wp = w + 2 * pad                                   # 18
    hp = h + 2 * pad + (kh - 1 - pad)                  # 19 (guard row)
    lp = hp * wp                                       # 342
    mwide = h * wp                                     # 288 "wide" output columns
    xp = jnp.pad(x_nchw.astype(jnp.float32),
                 ((0, 0), (0, 0), (pad, pad + (kh - 1 - pad)), (pad, pad)))
    x_flat = xp.reshape(n, cin, lp)                    # contiguous collapse: free view

    b_col = bias.reshape(cout, 1).astype(jnp.float32)  # broadcast along lanes
    u0 = u0.astype(jnp.float32)                        # (1, C)

    def kernel(wT_ref, u_ref, b_ref, x_ref, out_ref, u_out_ref, sig_ref):
        wT_k = wT_ref[...]                             # (C, R)
        u = u_ref[...]                                 # (1, C)
        u_raw = u
        # Two power iterations; tiny MXU matvecs, rsqrt on the (idle) EUP slot.
        for _ in range(POWER_ITERATIONS):
            v = jnp.dot(u, wT_k, preferred_element_type=jnp.float32)        # (1, R)
            v = v * lax.rsqrt(jnp.sum(v * v, axis=1, keepdims=True) + EPS * EPS)
            # u_raw = v @ _w  == contract last dims of v and _w.T (q @ k^T pattern),
            # so the (R, C) copy of the weight is never needed.
            u_raw = lax.dot_general(v, wT_k, (((1,), (1,)), ((), ())),
                                    preferred_element_type=jnp.float32)      # (1, C)
            u = u_raw * lax.rsqrt(
                jnp.sum(u_raw * u_raw, axis=1, keepdims=True) + EPS * EPS)
        # sigma = v @ _w @ u.T ; u_raw already holds (v @ _w).
        sigma = jnp.sum(u_raw * u, axis=1, keepdims=True)                    # (1, 1)
        # Exact scalar divide (keeps reported sigma / scaled weights exact);
        # folded once into the 288-element weight tile, not the whole output.
        wT_s = wT_k * (1.0 / sigma)                                          # (C, R)

        bias_col = b_ref[...]                          # (C, 1)
        # Conv as a sum of KH*KW small matmuls over shifted flat slices (in-kernel
        # im2col).  Static Python loops: n == 2, kh*kw == 9 -> 18 tiny matmuls.
        for b in range(n):
            acc = jnp.zeros((cout, mwide), jnp.float32)
            for t in range(kh * kw):
                off = (t // kw) * wp + (t % kw)        # dh*Wp + dw  (static)
                acc = acc + jnp.dot(
                    wT_s[:, t * cin:(t + 1) * cin],    # (C, CIN) tap weights
                    x_ref[b, :, off:off + mwide],      # (CIN, MWIDE) shifted patch
                    preferred_element_type=jnp.float32)
            out_ref[b] = (acc + bias_col).astype(out_ref.dtype)  # lane-dense store
        u_out_ref[...] = u                             # written once (g = 1)
        sig_ref[...] = sigma

    out_wide, u_new, sigma = pl.pallas_call(
        kernel,
        grid=(1,),                                     # single step: no recompute,
        in_specs=[                                     # weights/u resident throughout
            pl.BlockSpec((c, r), lambda i: (0, 0)),             # _w.T
            pl.BlockSpec((1, c), lambda i: (0, 0)),             # u0
            pl.BlockSpec((c, 1), lambda i: (0, 0)),             # bias column
            pl.BlockSpec((n, cin, lp), lambda i: (0, 0, 0)),    # padded flat acts
        ],
        out_specs=(
            pl.BlockSpec((n, cout, mwide), lambda i: (0, 0, 0)),
            pl.BlockSpec((1, c), lambda i: (0, 0)),
            pl.BlockSpec((1, 1), lambda i: (0, 0)),
        ),
        out_shape=(
            jax.ShapeDtypeStruct((n, cout, mwide), jnp.float32),
            jax.ShapeDtypeStruct((1, c), jnp.float32),
            jax.ShapeDtypeStruct((1, 1), jnp.float32),
        ),
        compiler_params=pltpu.CompilerParams(
            dimension_semantics=("arbitrary",)),
    )(wT, u0, b_col, x_flat)

    # Drop the Wp -> W padding columns: contiguous view + tiny slice, no transpose.
    out_nchw = out_wide.reshape(n, cout, h, wp)[:, :, :, :w]
    return out_nchw, u_new, sigma[0, 0]


# --------------------------------------------------------------------------
# Pure-JAX reference (mirrors the PyTorch module exactly).
# --------------------------------------------------------------------------
def reference_forward(x_nchw, weight_oihw, bias, u0):
    cout = weight_oihw.shape[0]
    w2d = jnp.transpose(weight_oihw, (2, 3, 1, 0)).reshape(-1, cout)
    u = u0
    v = None
    for _ in range(POWER_ITERATIONS):
        v = u @ w2d.T
        v = v / (jnp.linalg.norm(v, axis=1, keepdims=True) + EPS)
        u = v @ w2d
        u = u / (jnp.linalg.norm(u, axis=1, keepdims=True) + EPS)
    sigma = (v @ w2d @ u.T)[0, 0]
    w_sn = weight_oihw / sigma
    out = jax.lax.conv_general_dilated(
        x_nchw, w_sn, window_strides=(1, 1), padding=((1, 1), (1, 1)),
        dimension_numbers=("NCHW", "OIHW", "NCHW"))
    out = out + bias.reshape(1, -1, 1, 1)
    return out, u, sigma


if __name__ == "__main__":
    key = jax.random.PRNGKey(0)
    k1, k2, k3, k4 = jax.random.split(key, 4)

    N, CIN, H, W = 2, 4, 16, 16
    COUT, KH, KW = 8, 3, 3

    x = jax.random.normal(k1, (N, CIN, H, W), jnp.float32)
    weight = 0.1 * jax.random.normal(k2, (COUT, CIN, KH, KW), jnp.float32)
    bias = 0.1 * jax.random.normal(k3, (COUT,), jnp.float32)
    # weight_u buffer: normal(0,1), l2-normalized along dim=1 ('right' case).
    u0 = jax.random.normal(k4, (1, COUT), jnp.float32)
    u0 = u0 / (jnp.linalg.norm(u0, axis=1, keepdims=True) + EPS)

    out, u_new, sigma = spectral_norm_conv_forward(x, weight, bias, u0)
    out = jax.block_until_ready(out)

    ref_out, ref_u, ref_sigma = reference_forward(x, weight, bias, u0)
    # rsqrt-based normalization differs from the eps-guarded sqrt+divide at the
    # ~1e-7 relative level; tolerances below have ample margin.
    assert jnp.allclose(out, ref_out, atol=1e-4, rtol=1e-4), "conv output mismatch"
    assert jnp.allclose(u_new, ref_u, atol=1e-4, rtol=1e-4), "weight_u mismatch"
    assert jnp.allclose(sigma, ref_sigma, atol=1e-4, rtol=1e-4), "sigma mismatch"

    print("KERNEL_OK")
</pallas_src>

<mosaic_0001>
module attributes {stable_mosaic.version = 11 : i64} {
  func.func @kernel(%arg0: i32, %arg1: memref<8x36xf32, #tpu.memory_space<vmem>>, %arg2: memref<1x8xf32, #tpu.memory_space<vmem>>, %arg3: memref<8x1xf32, #tpu.memory_space<vmem>>, %arg4: memref<2x4x342xf32, #tpu.memory_space<vmem>>, %arg5: memref<2x8x288xf32, #tpu.memory_space<vmem>>, %arg6: memref<1x8xf32, #tpu.memory_space<vmem>>, %arg7: memref<1x1xf32, #tpu.memory_space<vmem>>) attributes {dimension_semantics = [#tpu.dimension_semantics<arbitrary>], iteration_bounds = array<i64: 1>, scalar_prefetch = 0 : i64, scratch_operands = 0 : i64, tpu.core_type = #tpu.core_type<tc>, window_params = [{pipeline_mode = #tpu.pipeline_mode<synchronous>, transform_indices = @transform_0, window_bounds = array<i64: 8, 36>}, {pipeline_mode = #tpu.pipeline_mode<synchronous>, transform_indices = @transform_1, window_bounds = array<i64: 1, 8>}, {pipeline_mode = #tpu.pipeline_mode<synchronous>, transform_indices = @transform_2, window_bounds = array<i64: 8, 1>}, {pipeline_mode = #tpu.pipeline_mode<synchronous>, transform_indices = @transform_3, window_bounds = array<i64: 2, 4, 342>}, {pipeline_mode = #tpu.pipeline_mode<synchronous>, transform_indices = @transform_4, window_bounds = array<i64: 2, 8, 288>}, {pipeline_mode = #tpu.pipeline_mode<synchronous>, transform_indices = @transform_5, window_bounds = array<i64: 1, 8>}, {pipeline_mode = #tpu.pipeline_mode<synchronous>, transform_indices = @transform_6, window_bounds = array<i64: 1, 1>}]} {
    %c0 = arith.constant 0 : index
    %c0_0 = arith.constant 0 : index
    %0 = vector.load %arg1[%c0, %c0_0] : memref<8x36xf32, #tpu.memory_space<vmem>>, vector<8x36xf32>
    %c0_1 = arith.constant 0 : index
    %c0_2 = arith.constant 0 : index
    %1 = vector.load %arg2[%c0_1, %c0_2] : memref<1x8xf32, #tpu.memory_space<vmem>>, vector<1x8xf32>
    %cst = arith.constant dense<0.000000e+00> : vector<1x36xf32>
    %2 = tpu.matmul %1, %0, %cst {dimension_numbers = #tpu.dot_dimension_numbers<[1], [0], [0], [1], [0, 0, 1, 1], [], []>} : vector<1x8xf32>, vector<8x36xf32>, vector<1x36xf32> -> vector<1x36xf32>
    %3 = arith.mulf %2, %2 : vector<1x36xf32>
    %cst_3 = arith.constant dense<0.000000e+00> : vector<1xf32>
    %4 = vector.multi_reduction <add>, %3, %cst_3 [1] : vector<1x36xf32> to vector<1xf32>
    %5 = vector.shape_cast %4 : vector<1xf32> to vector<1x1xf32>
    %cst_4 = arith.constant 1.000000e-24 : f32
    %6 = vector.broadcast %cst_4 : f32 to vector<1x1xf32>
    %7 = arith.addf %5, %6 : vector<1x1xf32>
    %8 = math.rsqrt %7 : vector<1x1xf32>
    %9 = vector.broadcast %8 : vector<1x1xf32> to vector<1x36xf32>
    %10 = arith.mulf %2, %9 : vector<1x36xf32>
    %cst_5 = arith.constant dense<0.000000e+00> : vector<1x8xf32>
    %11 = tpu.matmul %10, %0, %cst_5 {dimension_numbers = #tpu.dot_dimension_numbers<[1], [1], [0], [0], [0, 0, 1, 0], [], []>} : vector<1x36xf32>, vector<8x36xf32>, vector<1x8xf32> -> vector<1x8xf32>
    %12 = arith.mulf %11, %11 : vector<1x8xf32>
    %cst_6 = arith.constant dense<0.000000e+00> : vector<1xf32>
    %13 = vector.multi_reduction <add>, %12, %cst_6 [1] : vector<1x8xf32> to vector<1xf32>
    %14 = vector.shape_cast %13 : vector<1xf32> to vector<1x1xf32>
    %cst_7 = arith.constant 1.000000e-24 : f32
    %15 = vector.broadcast %cst_7 : f32 to vector<1x1xf32>
    %16 = arith.addf %14, %15 : vector<1x1xf32>
    %17 = math.rsqrt %16 : vector<1x1xf32>
    %18 = vector.broadcast %17 : vector<1x1xf32> to vector<1x8xf32>
    %19 = arith.mulf %11, %18 : vector<1x8xf32>
    %cst_8 = arith.constant dense<0.000000e+00> : vector<1x36xf32>
    %20 = tpu.matmul %19, %0, %cst_8 {dimension_numbers = #tpu.dot_dimension_numbers<[1], [0], [0], [1], [0, 0, 1, 1], [], []>} : vector<1x8xf32>, vector<8x36xf32>, vector<1x36xf32> -> vector<1x36xf32>
    %21 = arith.mulf %20, %20 : vector<1x36xf32>
    %cst_9 = arith.constant dense<0.000000e+00> : vector<1xf32>
    %22 = vector.multi_reduction <add>, %21, %cst_9 [1] : vector<1x36xf32> to vector<1xf32>
    %23 = vector.shape_cast %22 : vector<1xf32> to vector<1x1xf32>
    %cst_10 = arith.constant 1.000000e-24 : f32
    %24 = vector.broadcast %cst_10 : f32 to vector<1x1xf32>
    %25 = arith.addf %23, %24 : vector<1x1xf32>
    %26 = math.rsqrt %25 : vector<1x1xf32>
    %27 = vector.broadcast %26 : vector<1x1xf32> to vector<1x36xf32>
    %28 = arith.mulf %20, %27 : vector<1x36xf32>
    %cst_11 = arith.constant dense<0.000000e+00> : vector<1x8xf32>
    %29 = tpu.matmul %28, %0, %cst_11 {dimension_numbers = #tpu.dot_dimension_numbers<[1], [1], [0], [0], [0, 0, 1, 0], [], []>} : vector<1x36xf32>, vector<8x36xf32>, vector<1x8xf32> -> vector<1x8xf32>
    %30 = arith.mulf %29, %29 : vector<1x8xf32>
    %cst_12 = arith.constant dense<0.000000e+00> : vector<1xf32>
    %31 = vector.multi_reduction <add>, %30, %cst_12 [1] : vector<1x8xf32> to vector<1xf32>
    %32 = vector.shape_cast %31 : vector<1xf32> to vector<1x1xf32>
    %cst_13 = arith.constant 1.000000e-24 : f32
    %33 = vector.broadcast %cst_13 : f32 to vector<1x1xf32>
    %34 = arith.addf %32, %33 : vector<1x1xf32>
    %35 = math.rsqrt %34 : vector<1x1xf32>
    %36 = vector.broadcast %35 : vector<1x1xf32> to vector<1x8xf32>
    %37 = arith.mulf %29, %36 : vector<1x8xf32>
    %38 = arith.mulf %29, %37 : vector<1x8xf32>
    %cst_14 = arith.constant dense<0.000000e+00> : vector<1xf32>
    %39 = vector.multi_reduction <add>, %38, %cst_14 [1] : vector<1x8xf32> to vector<1xf32>
    %40 = vector.shape_cast %39 : vector<1xf32> to vector<1x1xf32>
    %cst_15 = arith.constant 1.000000e+00 : f32
    %41 = vector.broadcast %cst_15 : f32 to vector<1x1xf32>
    %42 = arith.divf %41, %40 : vector<1x1xf32>
    %43 = vector.broadcast %42 : vector<1x1xf32> to vector<8x36xf32>
    %44 = arith.mulf %0, %43 : vector<8x36xf32>
    %c0_16 = arith.constant 0 : index
    %c0_17 = arith.constant 0 : index
    %45 = vector.load %arg3[%c0_16, %c0_17] : memref<8x1xf32, #tpu.memory_space<vmem>>, vector<8x1xf32>
    %cst_18 = arith.constant 0.000000e+00 : f32
    %46 = vector.broadcast %cst_18 : f32 to vector<8x288xf32>
    %47 = vector.extract_strided_slice %44 {offsets = [0, 0], sizes = [8, 4], strides = [1, 1]} : vector<8x36xf32> to vector<8x4xf32>
    %c0_19 = arith.constant 0 : index
    %c0_20 = arith.constant 0 : index
    %c0_21 = arith.constant 0 : index
    %48 = vector.load %arg4[%c0_19, %c0_20, %c0_21] : memref<2x4x342xf32, #tpu.memory_space<vmem>>, vector<1x4x288xf32>
    %49 = vector.shape_cast %48 : vector<1x4x288xf32> to vector<4x288xf32>
    %cst_22 = arith.constant dense<0.000000e+00> : vector<8x288xf32>
    %50 = tpu.matmul %47, %49, %cst_22 {dimension_numbers = #tpu.dot_dimension_numbers<[1], [0], [0], [1], [0, 0, 1, 1], [], []>} : vector<8x4xf32>, vector<4x288xf32>, vector<8x288xf32> -> vector<8x288xf32>
    %51 = arith.addf %46, %50 : vector<8x288xf32>
    %52 = vector.extract_strided_slice %44 {offsets = [0, 4], sizes = [8, 4], strides = [1, 1]} : vector<8x36xf32> to vector<8x4xf32>
    %c0_23 = arith.constant 0 : index
    %c0_24 = arith.constant 0 : index
    %c1 = arith.constant 1 : index
    %53 = vector.load %arg4[%c0_23, %c0_24, %c1] : memref<2x4x342xf32, #tpu.memory_space<vmem>>, vector<1x4x288xf32>
    %54 = vector.shape_cast %53 : vector<1x4x288xf32> to vector<4x288xf32>
    %cst_25 = arith.constant dense<0.000000e+00> : vector<8x288xf32>
    %55 = tpu.matmul %52, %54, %cst_25 {dimension_numbers = #tpu.dot_dimension_numbers<[1], [0], [0], [1], [0, 0, 1, 1], [], []>} : vector<8x4xf32>, vector<4x288xf32>, vector<8x288xf32> -> vector<8x288xf32>
    %56 = arith.addf %51, %55 : vector<8x288xf32>
    %57 = vector.extract_strided_slice %44 {offsets = [0, 8], sizes = [8, 4], strides = [1, 1]} : vector<8x36xf32> to vector<8x4xf32>
    %c0_26 = arith.constant 0 : index
    %c0_27 = arith.constant 0 : index
    %c2 = arith.constant 2 : index
    %58 = vector.load %arg4[%c0_26, %c0_27, %c2] : memref<2x4x342xf32, #tpu.memory_space<vmem>>, vector<1x4x288xf32>
    %59 = vector.shape_cast %58 : vector<1x4x288xf32> to vector<4x288xf32>
    %cst_28 = arith.constant dense<0.000000e+00> : vector<8x288xf32>
    %60 = tpu.matmul %57, %59, %cst_28 {dimension_numbers = #tpu.dot_dimension_numbers<[1], [0], [0], [1], [0, 0, 1, 1], [], []>} : vector<8x4xf32>, vector<4x288xf32>, vector<8x288xf32> -> vector<8x288xf32>
    %61 = arith.addf %56, %60 : vector<8x288xf32>
    %62 = vector.extract_strided_slice %44 {offsets = [0, 12], sizes = [8, 4], strides = [1, 1]} : vector<8x36xf32> to vector<8x4xf32>
    %c0_29 = arith.constant 0 : index
    %c0_30 = arith.constant 0 : index
    %c18 = arith.constant 18 : index
    %63 = vector.load %arg4[%c0_29, %c0_30, %c18] : memref<2x4x342xf32, #tpu.memory_space<vmem>>, vector<1x4x288xf32>
    %64 = vector.shape_cast %63 : vector<1x4x288xf32> to vector<4x288xf32>
    %cst_31 = arith.constant dense<0.000000e+00> : vector<8x288xf32>
    %65 = tpu.matmul %62, %64, %cst_31 {dimension_numbers = #tpu.dot_dimension_numbers<[1], [0], [0], [1], [0, 0, 1, 1], [], []>} : vector<8x4xf32>, vector<4x288xf32>, vector<8x288xf32> -> vector<8x288xf32>
    %66 = arith.addf %61, %65 : vector<8x288xf32>
    %67 = vector.extract_strided_slice %44 {offsets = [0, 16], sizes = [8, 4], strides = [1, 1]} : vector<8x36xf32> to vector<8x4xf32>
    %c0_32 = arith.constant 0 : index
    %c0_33 = arith.constant 0 : index
    %c19 = arith.constant 19 : index
    %68 = vector.load %arg4[%c0_32, %c0_33, %c19] : memref<2x4x342xf32, #tpu.memory_space<vmem>>, vector<1x4x288xf32>
    %69 = vector.shape_cast %68 : vector<1x4x288xf32> to vector<4x288xf32>
    %cst_34 = arith.constant dense<0.000000e+00> : vector<8x288xf32>
    %70 = tpu.matmul %67, %69, %cst_34 {dimension_numbers = #tpu.dot_dimension_numbers<[1], [0], [0], [1], [0, 0, 1, 1], [], []>} : vector<8x4xf32>, vector<4x288xf32>, vector<8x288xf32> -> vector<8x288xf32>
    %71 = arith.addf %66, %70 : vector<8x288xf32>
    %72 = vector.extract_strided_slice %44 {offsets = [0, 20], sizes = [8, 4], strides = [1, 1]} : vector<8x36xf32> to vector<8x4xf32>
    %c0_35 = arith.constant 0 : index
    %c0_36 = arith.constant 0 : index
    %c20 = arith.constant 20 : index
    %73 = vector.load %arg4[%c0_35, %c0_36, %c20] : memref<2x4x342xf32, #tpu.memory_space<vmem>>, vector<1x4x288xf32>
    %74 = vector.shape_cast %73 : vector<1x4x288xf32> to vector<4x288xf32>
    %cst_37 = arith.constant dense<0.000000e+00> : vector<8x288xf32>
    %75 = tpu.matmul %72, %74, %cst_37 {dimension_numbers = #tpu.dot_dimension_numbers<[1], [0], [0], [1], [0, 0, 1, 1], [], []>} : vector<8x4xf32>, vector<4x288xf32>, vector<8x288xf32> -> vector<8x288xf32>
    %76 = arith.addf %71, %75 : vector<8x288xf32>
    %77 = vector.extract_strided_slice %44 {offsets = [0, 24], sizes = [8, 4], strides = [1, 1]} : vector<8x36xf32> to vector<8x4xf32>
    %c0_38 = arith.constant 0 : index
    %c0_39 = arith.constant 0 : index
    %c36 = arith.constant 36 : index
    %78 = vector.load %arg4[%c0_38, %c0_39, %c36] : memref<2x4x342xf32, #tpu.memory_space<vmem>>, vector<1x4x288xf32>
    %79 = vector.shape_cast %78 : vector<1x4x288xf32> to vector<4x288xf32>
    %cst_40 = arith.constant dense<0.000000e+00> : vector<8x288xf32>
    %80 = tpu.matmul %77, %79, %cst_40 {dimension_numbers = #tpu.dot_dimension_numbers<[1], [0], [0], [1], [0, 0, 1, 1], [], []>} : vector<8x4xf32>, vector<4x288xf32>, vector<8x288xf32> -> vector<8x288xf32>
    %81 = arith.addf %76, %80 : vector<8x288xf32>
    %82 = vector.extract_strided_slice %44 {offsets = [0, 28], sizes = [8, 4], strides = [1, 1]} : vector<8x36xf32> to vector<8x4xf32>
    %c0_41 = arith.constant 0 : index
    %c0_42 = arith.constant 0 : index
    %c37 = arith.constant 37 : index
    %83 = vector.load %arg4[%c0_41, %c0_42, %c37] : memref<2x4x342xf32, #tpu.memory_space<vmem>>, vector<1x4x288xf32>
    %84 = vector.shape_cast %83 : vector<1x4x288xf32> to vector<4x288xf32>
    %cst_43 = arith.constant dense<0.000000e+00> : vector<8x288xf32>
    %85 = tpu.matmul %82, %84, %cst_43 {dimension_numbers = #tpu.dot_dimension_numbers<[1], [0], [0], [1], [0, 0, 1, 1], [], []>} : vector<8x4xf32>, vector<4x288xf32>, vector<8x288xf32> -> vector<8x288xf32>
    %86 = arith.addf %81, %85 : vector<8x288xf32>
    %87 = vector.extract_strided_slice %44 {offsets = [0, 32], sizes = [8, 4], strides = [1, 1]} : vector<8x36xf32> to vector<8x4xf32>
    %c0_44 = arith.constant 0 : index
    %c0_45 = arith.constant 0 : index
    %c38 = arith.constant 38 : index
    %88 = vector.load %arg4[%c0_44, %c0_45, %c38] : memref<2x4x342xf32, #tpu.memory_space<vmem>>, vector<1x4x288xf32>
    %89 = vector.shape_cast %88 : vector<1x4x288xf32> to vector<4x288xf32>
    %cst_46 = arith.constant dense<0.000000e+00> : vector<8x288xf32>
    %90 = tpu.matmul %87, %89, %cst_46 {dimension_numbers = #tpu.dot_dimension_numbers<[1], [0], [0], [1], [0, 0, 1, 1], [], []>} : vector<8x4xf32>, vector<4x288xf32>, vector<8x288xf32> -> vector<8x288xf32>
    %91 = arith.addf %86, %90 : vector<8x288xf32>
    %92 = vector.broadcast %45 : vector<8x1xf32> to vector<8x288xf32>
    %93 = arith.addf %91, %92 : vector<8x288xf32>
    %c0_47 = arith.constant 0 : index
    %c0_48 = arith.constant 0 : index
    %c0_49 = arith.constant 0 : index
    %94 = vector.load %arg5[%c0_47, %c0_48, %c0_49] : memref<2x8x288xf32, #tpu.memory_space<vmem>>, vector<1x8x288xf32>
    %95 = vector.shape_cast %94 : vector<1x8x288xf32> to vector<8x288xf32>
    %96 = vector.shape_cast %93 : vector<8x288xf32> to vector<1x8x288xf32>
    tpu.vector_store %arg5[%c0_47, %c0_48, %c0_49], %96 {strides = array<i32>} : memref<2x8x288xf32, #tpu.memory_space<vmem>>, vector<1x8x288xf32>,
    %cst_50 = arith.constant 0.000000e+00 : f32
    %97 = vector.broadcast %cst_50 : f32 to vector<8x288xf32>
    %98 = vector.extract_strided_slice %44 {offsets = [0, 0], sizes = [8, 4], strides = [1, 1]} : vector<8x36xf32> to vector<8x4xf32>
    %c1_51 = arith.constant 1 : index
    %c0_52 = arith.constant 0 : index
    %c0_53 = arith.constant 0 : index
    %99 = vector.load %arg4[%c1_51, %c0_52, %c0_53] : memref<2x4x342xf32, #tpu.memory_space<vmem>>, vector<1x4x288xf32>
    %100 = vector.shape_cast %99 : vector<1x4x288xf32> to vector<4x288xf32>
    %cst_54 = arith.constant dense<0.000000e+00> : vector<8x288xf32>
    %101 = tpu.matmul %98, %100, %cst_54 {dimension_numbers = #tpu.dot_dimension_numbers<[1], [0], [0], [1], [0, 0, 1, 1], [], []>} : vector<8x4xf32>, vector<4x288xf32>, vector<8x288xf32> -> vector<8x288xf32>
    %102 = arith.addf %97, %101 : vector<8x288xf32>
    %103 = vector.extract_strided_slice %44 {offsets = [0, 4], sizes = [8, 4], strides = [1, 1]} : vector<8x36xf32> to vector<8x4xf32>
    %c1_55 = arith.constant 1 : index
    %c0_56 = arith.constant 0 : index
    %c1_57 = arith.constant 1 : index
    %104 = vector.load %arg4[%c1_55, %c0_56, %c1_57] : memref<2x4x342xf32, #tpu.memory_space<vmem>>, vector<1x4x288xf32>
    %105 = vector.shape_cast %104 : vector<1x4x288xf32> to vector<4x288xf32>
    %cst_58 = arith.constant dense<0.000000e+00> : vector<8x288xf32>
    %106 = tpu.matmul %103, %105, %cst_58 {dimension_numbers = #tpu.dot_dimension_numbers<[1], [0], [0], [1], [0, 0, 1, 1], [], []>} : vector<8x4xf32>, vector<4x288xf32>, vector<8x288xf32> -> vector<8x288xf32>
    %107 = arith.addf %102, %106 : vector<8x288xf32>
    %108 = vector.extract_strided_slice %44 {offsets = [0, 8], sizes = [8, 4], strides = [1, 1]} : vector<8x36xf32> to vector<8x4xf32>
    %c1_59 = arith.constant 1 : index
    %c0_60 = arith.constant 0 : index
    %c2_61 = arith.constant 2 : index
    %109 = vector.load %arg4[%c1_59, %c0_60, %c2_61] : memref<2x4x342xf32, #tpu.memory_space<vmem>>, vector<1x4x288xf32>
    %110 = vector.shape_cast %109 : vector<1x4x288xf32> to vector<4x288xf32>
    %cst_62 = arith.constant dense<0.000000e+00> : vector<8x288xf32>
    %111 = tpu.matmul %108, %110, %cst_62 {dimension_numbers = #tpu.dot_dimension_numbers<[1], [0], [0], [1], [0, 0, 1, 1], [], []>} : vector<8x4xf32>, vector<4x288xf32>, vector<8x288xf32> -> vector<8x288xf32>
    %112 = arith.addf %107, %111 : vector<8x288xf32>
    %113 = vector.extract_strided_slice %44 {offsets = [0, 12], sizes = [8, 4], strides = [1, 1]} : vector<8x36xf32> to vector<8x4xf32>
    %c1_63 = arith.constant 1 : index
    %c0_64 = arith.constant 0 : index
    %c18_65 = arith.constant 18 : index
    %114 = vector.load %arg4[%c1_63, %c0_64, %c18_65] : memref<2x4x342xf32, #tpu.memory_space<vmem>>, vector<1x4x288xf32>
    %115 = vector.shape_cast %114 : vector<1x4x288xf32> to vector<4x288xf32>
    %cst_66 = arith.constant dense<0.000000e+00> : vector<8x288xf32>
    %116 = tpu.matmul %113, %115, %cst_66 {dimension_numbers = #tpu.dot_dimension_numbers<[1], [0], [0], [1], [0, 0, 1, 1], [], []>} : vector<8x4xf32>, vector<4x288xf32>, vector<8x288xf32> -> vector<8x288xf32>
    %117 = arith.addf %112, %116 : vector<8x288xf32>
    %118 = vector.extract_strided_slice %44 {offsets = [0, 16], sizes = [8, 4], strides = [1, 1]} : vector<8x36xf32> to vector<8x4xf32>
    %c1_67 = arith.constant 1 : index
    %c0_68 = arith.constant 0 : index
    %c19_69 = arith.constant 19 : index
    %119 = vector.load %arg4[%c1_67, %c0_68, %c19_69] : memref<2x4x342xf32, #tpu.memory_space<vmem>>, vector<1x4x288xf32>
    %120 = vector.shape_cast %119 : vector<1x4x288xf32> to vector<4x288xf32>
    %cst_70 = arith.constant dense<0.000000e+00> : vector<8x288xf32>
    %121 = tpu.matmul %118, %120, %cst_70 {dimension_numbers = #tpu.dot_dimension_numbers<[1], [0], [0], [1], [0, 0, 1, 1], [], []>} : vector<8x4xf32>, vector<4x288xf32>, vector<8x288xf32> -> vector<8x288xf32>
    %122 = arith.addf %117, %121 : vector<8x288xf32>
    %123 = vector.extract_strided_slice %44 {offsets = [0, 20], sizes = [8, 4], strides = [1, 1]} : vector<8x36xf32> to vector<8x4xf32>
    %c1_71 = arith.constant 1 : index
    %c0_72 = arith.constant 0 : index
    %c20_73 = arith.constant 20 : index
    %124 = vector.load %arg4[%c1_71, %c0_72, %c20_73] : memref<2x4x342xf32, #tpu.memory_space<vmem>>, vector<1x4x288xf32>
    %125 = vector.shape_cast %124 : vector<1x4x288xf32> to vector<4x288xf32>
    %cst_74 = arith.constant dense<0.000000e+00> : vector<8x288xf32>
    %126 = tpu.matmul %123, %125, %cst_74 {dimension_numbers = #tpu.dot_dimension_numbers<[1], [0], [0], [1], [0, 0, 1, 1], [], []>} : vector<8x4xf32>, vector<4x288xf32>, vector<8x288xf32> -> vector<8x288xf32>
    %127 = arith.addf %122, %126 : vector<8x288xf32>
    %128 = vector.extract_strided_slice %44 {offsets = [0, 24], sizes = [8, 4], strides = [1, 1]} : vector<8x36xf32> to vector<8x4xf32>
    %c1_75 = arith.constant 1 : index
    %c0_76 = arith.constant 0 : index
    %c36_77 = arith.constant 36 : index
    %129 = vector.load %arg4[%c1_75, %c0_76, %c36_77] : memref<2x4x342xf32, #tpu.memory_space<vmem>>, vector<1x4x288xf32>
    %130 = vector.shape_cast %129 : vector<1x4x288xf32> to vector<4x288xf32>
    %cst_78 = arith.constant dense<0.000000e+00> : vector<8x288xf32>
    %131 = tpu.matmul %128, %130, %cst_78 {dimension_numbers = #tpu.dot_dimension_numbers<[1], [0], [0], [1], [0, 0, 1, 1], [], []>} : vector<8x4xf32>, vector<4x288xf32>, vector<8x288xf32> -> vector<8x288xf32>
    %132 = arith.addf %127, %131 : vector<8x288xf32>
    %133 = vector.extract_strided_slice %44 {offsets = [0, 28], sizes = [8, 4], strides = [1, 1]} : vector<8x36xf32> to vector<8x4xf32>
    %c1_79 = arith.constant 1 : index
    %c0_80 = arith.constant 0 : index
    %c37_81 = arith.constant 37 : index
    %134 = vector.load %arg4[%c1_79, %c0_80, %c37_81] : memref<2x4x342xf32, #tpu.memory_space<vmem>>, vector<1x4x288xf32>
    %135 = vector.shape_cast %134 : vector<1x4x288xf32> to vector<4x288xf32>
    %cst_82 = arith.constant dense<0.000000e+00> : vector<8x288xf32>
    %136 = tpu.matmul %133, %135, %cst_82 {dimension_numbers = #tpu.dot_dimension_numbers<[1], [0], [0], [1], [0, 0, 1, 1], [], []>} : vector<8x4xf32>, vector<4x288xf32>, vector<8x288xf32> -> vector<8x288xf32>
    %137 = arith.addf %132, %136 : vector<8x288xf32>
    %138 = vector.extract_strided_slice %44 {offsets = [0, 32], sizes = [8, 4], strides = [1, 1]} : vector<8x36xf32> to vector<8x4xf32>
    %c1_83 = arith.constant 1 : index
    %c0_84 = arith.constant 0 : index
    %c38_85 = arith.constant 38 : index
    %139 = vector.load %arg4[%c1_83, %c0_84, %c38_85] : memref<2x4x342xf32, #tpu.memory_space<vmem>>, vector<1x4x288xf32>
    %140 = vector.shape_cast %139 : vector<1x4x288xf32> to vector<4x288xf32>
    %cst_86 = arith.constant dense<0.000000e+00> : vector<8x288xf32>
    %141 = tpu.matmul %138, %140, %cst_86 {dimension_numbers = #tpu.dot_dimension_numbers<[1], [0], [0], [1], [0, 0, 1, 1], [], []>} : vector<8x4xf32>, vector<4x288xf32>, vector<8x288xf32> -> vector<8x288xf32>
    %142 = arith.addf %137, %141 : vector<8x288xf32>
    %143 = vector.broadcast %45 : vector<8x1xf32> to vector<8x288xf32>
    %144 = arith.addf %142, %143 : vector<8x288xf32>
    %c1_87 = arith.constant 1 : index
    %c0_88 = arith.constant 0 : index
    %c0_89 = arith.constant 0 : index
    %145 = vector.load %arg5[%c1_87, %c0_88, %c0_89] : memref<2x8x288xf32, #tpu.memory_space<vmem>>, vector<1x8x288xf32>
    %146 = vector.shape_cast %145 : vector<1x8x288xf32> to vector<8x288xf32>
    %147 = vector.shape_cast %144 : vector<8x288xf32> to vector<1x8x288xf32>
    tpu.vector_store %arg5[%c1_87, %c0_88, %c0_89], %147 {strides = array<i32>} : memref<2x8x288xf32, #tpu.memory_space<vmem>>, vector<1x8x288xf32>,
    %c0_90 = arith.constant 0 : index
    %c0_91 = arith.constant 0 : index
    %148 = vector.load %arg6[%c0_90, %c0_91] : memref<1x8xf32, #tpu.memory_space<vmem>>, vector<1x8xf32>
    tpu.vector_store %arg6[%c0_90, %c0_91], %37 {strides = array<i32>} : memref<1x8xf32, #tpu.memory_space<vmem>>, vector<1x8xf32>,
    %c0_92 = arith.constant 0 : index
    %c0_93 = arith.constant 0 : index
    %149 = vector.load %arg7[%c0_92, %c0_93] : memref<1x1xf32, #tpu.memory_space<vmem>>, vector<1x1xf32>
    tpu.vector_store %arg7[%c0_92, %c0_93], %40 {strides = array<i32>} : memref<1x1xf32, #tpu.memory_space<vmem>>, vector<1x1xf32>,
    return
  }
  func.func @transform_0(%arg0: i32) -> (i32, i32) {
    %c0_i32 = arith.constant 0 : i32
    %c0_i32_0 = arith.constant 0 : i32
    %c0_i32_1 = arith.constant 0 : i32
    return %c0_i32, %c0_i32_0 : i32, i32
  }
  func.func @transform_1(%arg0: i32) -> (i32, i32) {
    %c0_i32 = arith.constant 0 : i32
    %c0_i32_0 = arith.constant 0 : i32
    %c0_i32_1 = arith.constant 0 : i32
    return %c0_i32, %c0_i32_0 : i32, i32
  }
  func.func @transform_2(%arg0: i32) -> (i32, i32) {
    %c0_i32 = arith.constant 0 : i32
    %c0_i32_0 = arith.constant 0 : i32
    %c0_i32_1 = arith.constant 0 : i32
    return %c0_i32, %c0_i32_0 : i32, i32
  }
  func.func @transform_3(%arg0: i32) -> (i32, i32, i32) {
    %c0_i32 = arith.constant 0 : i32
    %c0_i32_0 = arith.constant 0 : i32
    %c0_i32_1 = arith.constant 0 : i32
    %c0_i32_2 = arith.constant 0 : i32
    return %c0_i32, %c0_i32_0, %c0_i32_1 : i32, i32, i32
  }
  func.func @transform_4(%arg0: i32) -> (i32, i32, i32) {
    %c0_i32 = arith.constant 0 : i32
    %c0_i32_0 = arith.constant 0 : i32
    %c0_i32_1 = arith.constant 0 : i32
    %c0_i32_2 = arith.constant 0 : i32
    return %c0_i32, %c0_i32_0, %c0_i32_1 : i32, i32, i32
  }
  func.func @transform_5(%arg0: i32) -> (i32, i32) {
    %c0_i32 = arith.constant 0 : i32
    %c0_i32_0 = arith.constant 0 : i32
    %c0_i32_1 = arith.constant 0 : i32
    return %c0_i32, %c0_i32_0 : i32, i32
  }
  func.func @transform_6(%arg0: i32) -> (i32, i32) {
    %c0_i32 = arith.constant 0 : i32
    %c0_i32_0 = arith.constant 0 : i32
    %c0_i32_1 = arith.constant 0 : i32
    return %c0_i32, %c0_i32_0 : i32, i32
  }
}

</mosaic_0001>

<bundles_post_ra>
// kernel: tpu_custom_call.1
= control target key start
LH: loop header
LB: loop body
LE: loop exit
PB: predicated region body
PF: predicated region fallthrough
CT: control target
= control target key end

     0   :  { %12 = vsyncpa [#allocation3], 0  ;;  %s2562_s0 = inlined_call_operand.vmem [shape: f32[8,36], index: 0, kind: input, shape index: {}]   ;;  %s2563_s1 = inlined_call_operand.vmem [shape: f32[1,8], index: 1, kind: input, shape index: {}]   ;;  %s2564_s2 = inlined_call_operand.vmem [shape: f32[8,1], index: 2, kind: input, shape index: {}]   ;;  %s2565_s3 = inlined_call_operand.hbm [shape: f32[2,4,342], index: 3, kind: input, shape index: {}]   ;;  %s2566_s4 = inlined_call_operand.hbm [shape: f32[2,8,288], index: 4, kind: output, shape index: {0}]   ;;  %s2567_s5 = inlined_call_operand.hbm [shape: f32[1,8], index: 5, kind: output, shape index: {1}]   ;;  %s2568_s6 = inlined_call_operand.hbm [shape: f32[1,1], index: 6, kind: output, shape index: {2}]  }
   0x1   :  { %13 = vsyncpa [#allocation4], 0 }
   0x2   :  { %14 = vsyncpa [#allocation7], 0  ;;  %s25_s23 = sshll.u32 %s2565_s3, 4  ;;  %s2125_s24 = smov [#allocation2]   ;;  %s26_s23 = int_to_ptr.hbm [resolvable:$true] %s25_s23 }
   0x3   :  { %s27_s25 = sshll.u32 %s2125_s24, 4  ;;  %s2126_s26 = smov 192   ;;  %s28_s25 = int_to_ptr.vmem [resolvable:$true] %s27_s25 }
   0x4   :  { %s2127_s27 = smov 12  }
   0x5   :  { %33 = dma.hbm_to_vmem [thread:$0]  %s26_s23, 384, %s28_s25, [#allocation3], %s2126_s26, %s2126_s26, %s2127_s27  }
   0x6   :  { %2119 = dma.done.wait [#allocation3], 384  }
   0x7   :  { %2120 = vsyncadd [#allocation3], 4294966912  ;;  %vm40_vm0 = vcmask 64512   ;;  %v2190_v0 = vld [vmem:[%s2562_s0] sm:$0xff]  ;;  %vm65_vm1 = vcmask 286720   ;;  %vm81_vm2 = vcmask 293888  }
   0x8   :  { %v39_v1 = vld [vmem:[%s2563_s1] sm:$0x1]  ;;  %59 = vmatpush.msra.mxu0 %v2190_v0  ;;  %143 = vmatpush.msra.mxu2 %v2190_v0  ;;  %vm109_vm6 = vcmask 57344   ;;  %v226_v41 = vld [vmem:[#allocation2 + $0x8] sm:$0xf]  ;;  %v2208_v42 = vld [vmem:[#allocation2] sm:$0xff] }
   0x9   :  { %1873 = vmatmul.msk.f32.vlgmr.msra.gmra.mxu0 %vm40_vm0, %v39_v1  ;;  %1874 = vmatpush.xpose.msk.msra.mxu1 %vm81_vm2, %v2190_v0  ;;  %234 = vst [vmem:[#allocation1 + $0x10] ss:$2 sm:$0xff] %v226_v41  ;;  %s2128_s0 = smov 127   ;;  %vm244_vm13 = vcmask 1039360   ;;  %vm250_vm14 = vcmask 1043456   ;;  %s2129_s1 = smov 126  }
   0xa   :  { %1877 = vmatpush.xpose.msk.msra.mxu3 %vm81_vm2, %v2190_v0  ;;  %232 = vst [vmem:[#allocation1] ss:$2 sm:$0xff] %v2208_v42  ;;  %v392_v55 = vld [vmem:[#allocation2 + $0x8] sm:$0xf]  ;;  %s2130_s3 = smov 110   ;;  %s2131_s8 = smov 108  }
   0xb   :  { %v484_v59 = vld [vmem:[#allocation2 + $0x8] sm:$0xf]  ;;  %s2132_s9 = smov 109   ;;  %s2133_s10 = smov 91  }
   0xc   :  { %s2134_s11 = smov 92   ;;  %s2135_s12 = smov 90  }
   0xd   :  { %s2136_s13 = smov 120   ;;  %s2137_s14 = smov 124  }
   0xe   :  { %s2138_s15 = smov 100   ;;  %s2139_s16 = smov 112  }
   0xf   :  { %s2140_s17 = smov 116   ;;  %s2141_s18 = smov 104  }
  0x10   :  { %v237_v43 = vld.sshfl [vmem:[#allocation1 + $0x10] sm:$0xff pattern:$0x75316420]  ;;  %s2142_s19 = smov 96   ;;  %s1843_s23 = sshll.u32 %s2567_s5, 4  ;;  %s1844_s23 = int_to_ptr.hbm [resolvable:$true] %s1843_s23 }
  0x11   :  { %319 = vst [vmem:[#allocation1 + $0x10] ss:$2 sm:$0xff] %v226_v41  ;;  %v236_v44 = vld.sshfl [vmem:[#allocation1 + $0x8] sm:$0xff pattern:$0x75316420]  ;;  %s2144_s24 = smov [#allocation6]  }
  0x12   :  { %240 = vrot.lane.b32.xlu2 %v236_v44, %s2128_s0  ;;  %v235_v45 = vld.sshfl [vmem:[#allocation1] sm:$0xff pattern:$0x75316420]  ;;  %s1841_s25 = sshll.u32 %s2144_s24, 4  ;;  %s1854_s28 = sshll.u32 %s2568_s6, 4  ;;  %s1842_s25 = int_to_ptr.vmem [resolvable:$true] %s1841_s25  ;;  %s1855_s28 = int_to_ptr.hbm [resolvable:$true] %s1854_s28 }
  0x13   :  { %317 = vst [vmem:[#allocation1] ss:$2 sm:$0xff] %v2208_v42  ;;  %s2145_s29 = smov [#allocation8]   ;;  %s2146_s5 = smov [#allocation5]  }
  0x14   :  { %s1852_s30 = sshll.u32 %s2145_s29, 4  ;;  %s1827_s6 = sshll.u32 %s2146_s5, 4  ;;  %s1853_s30 = int_to_ptr.vmem [resolvable:$true] %s1852_s30  ;;  %s1828_s6 = int_to_ptr.vmem [resolvable:$true] %s1827_s6 }
  0x18   :  { %v322_v54 = vld.sshfl [vmem:[#allocation1 + $0x10] sm:$0xff pattern:$0x75316420] }
  0x19   :  { %399 = vst [vmem:[#allocation1 + $0x10] ss:$2 sm:$0xff] %v392_v55 }
  0x1a   :  { %238 = vrot.lane.b32.xlu2 %v235_v45, %s2128_s0  ;;  %v320_v51 = vld.sshfl [vmem:[#allocation1] sm:$0xff pattern:$0x75316420]  ;;  %v321_v53 = vld.sshfl [vmem:[#allocation1 + $0x8] sm:$0xff pattern:$0x75316420] }
  0x1b   :  { %1885 = vmatpush.msk.msrb.mxu3 %vm250_vm14, %v320_v51  ;;  %397 = vst [vmem:[#allocation1] ss:$2 sm:$0xff] %v2208_v42 }
  0x20   :  { %v402_v63 = vld.sshfl [vmem:[#allocation1 + $0x10] sm:$0xff pattern:$0x75316420] }
  0x21   :  { %491 = vst [vmem:[#allocation1 + $0x10] ss:$2 sm:$0xff] %v484_v59  ;;  %v1292_v59 = vld [vmem:[#allocation2 + $0x14] sm:$0xf] }
  0x22   :  { %v400_v61 = vld.sshfl [vmem:[#allocation1] sm:$0xff pattern:$0x75316420]  ;;  %v401_v62 = vld.sshfl [vmem:[#allocation1 + $0x8] sm:$0xff pattern:$0x75316420] }
  0x23   :  { %489 = vst [vmem:[#allocation1] ss:$2 sm:$0xff] %v2208_v42 }
  0x6c   :  { %v241_v49 = vpop.permute.xlu2 %240 }
  0x74   :  { %v239_v58 = vpop.permute.xlu2 %238 }
  0x75   :  { %v245_v60 = vsel %vm244_vm13, %v239_v58, %v241_v49 }
  0x76   :  { %1879 = vmatpush.msk.msrb.mxu0 %vm250_vm14, %v245_v60 }
  0x78   :  { %1887 = vmatpush.msk.msra.mxu0 %vm250_vm14, %v321_v53 }
  0x86   :  { %v61_v2 = vpop.f32.mrf.mxu0 }
  0x87   :  { %v64_v3 = vmul.f32 %v61_v2, %v61_v2 }
  0x89   :  { %v66_v4 = vsel %vm65_vm1, %v64_v3, 0.0  ;;  %v492_v3 = vld.sshfl [vmem:[#allocation1] sm:$0xff pattern:$0x75316420] }
  0x8a   :  { %67 = vadd.xlane.f32.xlu0 %v66_v4  ;;  %v493_v4 = vld.sshfl [vmem:[#allocation1 + $0x8] sm:$0xff pattern:$0x75316420] }
  0x8b   :  { %581 = vst [vmem:[#allocation1] ss:$2 sm:$0xff] %v2208_v42 }
  0xfd   :  { %v68_v5 = vpop.xlane.xlu0 %67 }
  0xfe   :  { %v69_v6 = vadd.f32 1e-24, %v68_v5 }
 0x100   :  { %2013 = vrsqrt.f32 %v69_v6  ;;  %vm76_vm4 = vweird.f32 %v69_v6 }
 0x106   :  { %v2014_v7 = vpop.eup %2013 }
 0x107   :  { %v71_v8 = vmul.f32 %v2014_v7, %v69_v6  ;;  %vm77_vm3 = vweird.f32 %v2014_v7 }
 0x108   :  { %vm78_vm5 = vmor %vm76_vm4, %vm77_vm3 }
 0x109   :  { %v72_v9 = vmul.f32 %v2014_v7, %v71_v8 }
 0x10b   :  { %v73_v10 = vmul.f32 0.5, %v72_v9  ;;  %v584_v9 = vld.sshfl [vmem:[#allocation1] sm:$0xff pattern:$0x75316420] }
 0x10d   :  { %v74_v11 = vsub.f32 1.5, %v73_v10  ;;  %v585_v10 = vld.sshfl [vmem:[#allocation1 + $0x8] sm:$0xff pattern:$0x75316420] }
 0x10e   :  { %673 = vst [vmem:[#allocation1] ss:$2 sm:$0xff] %v2208_v42 }
 0x10f   :  { %v75_v12 = vmul.f32 %v2014_v7, %v74_v11 }
 0x111   :  { %v79_v13 = vsel %vm78_vm5, %v2014_v7, %v75_v12 }
 0x112   :  { %v80_v14 = vmul.f32 %v79_v13, %v61_v2 }
 0x114   :  { %1875 = vmatmul.msk.f32.vlgmr.msra.gmra.mxu1 %vm81_vm2, %v80_v14 }
 0x191   :  { %v105_v15 = vpop.f32.mrf.mxu1 }
 0x192   :  { %v108_v16 = vmul.f32 %v105_v15, %v105_v15 }
 0x194   :  { %v110_v17 = vsel %vm109_vm6, %v108_v16, 0.0  ;;  %v576_v16 = vld [vmem:[#allocation2 + $0x8] sm:$0xf] }
 0x195   :  { %111 = vadd.xlane.f32.xlu0 %v110_v17  ;;  %v676_v17 = vld.sshfl [vmem:[#allocation1] sm:$0xff pattern:$0x75316420] }
 0x1a9   :  { %242 = vrot.lane.b32.xlu0 %v237_v43, %s2128_s0  ;;  %v1049_v43 = vld [vmem:[#allocation2 + $0x14] sm:$0xf] }
 0x1b1   :  { %405 = vrot.lane.b32.xlu0 %v401_v62, %s2129_s1 }
 0x1b9   :  { %497 = vrot.lane.b32.xlu0 %v493_v4, %s2130_s3 }
 0x1c1   :  { %403 = vrot.lane.b32.xlu0 %v400_v61, %s2129_s1 }
 0x208   :  { %v112_v18 = vpop.xlane.xlu0 %111 }
 0x209   :  { %v113_v19 = vadd.f32 1e-24, %v112_v18  ;;  %v677_v18 = vld.sshfl [vmem:[#allocation1 + $0x8] sm:$0xff pattern:$0x75316420] }
 0x20a   :  { %765 = vst [vmem:[#allocation1] ss:$2 sm:$0xff] %v2208_v42 }
 0x20b   :  { %2015 = vrsqrt.f32 %v113_v19  ;;  %vm120_vm8 = vweird.f32 %v113_v19 }
 0x211   :  { %v2016_v20 = vpop.eup %2015 }
 0x212   :  { %v115_v21 = vmul.f32 %v2016_v20, %v113_v19  ;;  %vm121_vm7 = vweird.f32 %v2016_v20  ;;  %v668_v19 = vld [vmem:[#allocation2 + $0x8] sm:$0xf] }
 0x213   :  { %vm122_vm9 = vmor %vm120_vm8, %vm121_vm7  ;;  %vm247_vm7 = vcmask 31744   ;;  %vm409_vm8 = vcmask 1031168  }
 0x214   :  { %v116_v22 = vmul.f32 %v2016_v20, %v115_v21  ;;  %v769_v21 = vld.sshfl [vmem:[#allocation1 + $0x8] sm:$0xff pattern:$0x75316420] }
 0x216   :  { %v117_v23 = vmul.f32 0.5, %v116_v22 }
 0x218   :  { %v118_v24 = vsub.f32 1.5, %v117_v23  ;;  %v760_v23 = vld [vmem:[#allocation2 + $0x8] sm:$0xf] }
 0x21a   :  { %v119_v25 = vmul.f32 %v2016_v20, %v118_v24 }
 0x21b   :  { %v243_v50 = vpop.permute.xlu0 %242 }
 0x21c   :  { %v123_v26 = vsel %vm122_vm9, %v2016_v20, %v119_v25  ;;  %v246_v52 = vsel %vm244_vm13, %v241_v49, %v243_v50  ;;  %1883 = vmatpush.msk.msrb.mxu1 %vm250_vm14, %v243_v50  ;;  %v2236_v20 = vld.sshfl [vmem:[#allocation1] sm:$0xff pattern:$0x75316420]  ;;  %vm501_vm9 = vcmask 900096  }
 0x21d   :  { %v124_v27 = vmul.f32 %v123_v26, %v105_v15  ;;  %1881 = vmatpush.msk.msrb.mxu2 %vm250_vm14, %v246_v52  ;;  %v494_v15 = vld.sshfl [vmem:[#allocation1 + $0x10] sm:$0xff pattern:$0x75316420]  ;;  %857 = vst [vmem:[#allocation1] ss:$2 sm:$0xff] %v2208_v42 }
 0x21e   :  { %499 = vrot.lane.b32.xlu0 %v494_v15, %s2130_s3  ;;  %583 = vst [vmem:[#allocation1 + $0x10] ss:$2 sm:$0xff] %v576_v16 }
 0x21f   :  { %1876 = vmatmul.msk.f32.vlgmr.msra.gmra.mxu2 %vm40_vm0, %v124_v27 }
 0x220   :  { %1889 = vmatpush.msk.msra.mxu2 %vm250_vm14, %v322_v54  ;;  %v1205_v54 = vld [vmem:[#allocation2 + $0x14] sm:$0xf] }
 0x223   :  { %v406_v58 = vpop.permute.xlu0 %405 }
 0x224   :  { %v860_v24 = vld.sshfl [vmem:[#allocation1] sm:$0xff pattern:$0x75316420]  ;;  %v861_v25 = vld.sshfl [vmem:[#allocation1 + $0x8] sm:$0xff pattern:$0x75316420] }
 0x225   :  { %v586_v22 = vld.sshfl [vmem:[#allocation1 + $0x10] sm:$0xff pattern:$0x75316420]  ;;  %949 = vst [vmem:[#allocation1] ss:$2 sm:$0xff] %v2208_v42 }
 0x226   :  { %679 = vrot.lane.b32.xlu0 %v676_v17, %s2131_s8  ;;  %675 = vst [vmem:[#allocation1 + $0x10] ss:$2 sm:$0xff] %v668_v19  ;;  %v1553_v17 = vld [vmem:[#allocation2 + $0x14] sm:$0xf] }
 0x22d   :  { %v678_v26 = vld.sshfl [vmem:[#allocation1 + $0x10] sm:$0xff pattern:$0x75316420] }
 0x22e   :  { %863 = vrot.lane.b32.xlu0 %v860_v24, %s2133_s10  ;;  %767 = vst [vmem:[#allocation1 + $0x10] ss:$2 sm:$0xff] %v760_v23 }
 0x235   :  { %v770_v27 = vld.sshfl [vmem:[#allocation1 + $0x10] sm:$0xff pattern:$0x75316420] }
 0x2a2   :  { %v145_v28 = vpop.f32.mrf.mxu2 }
 0x2a3   :  { %v148_v29 = vmul.f32 %v145_v28, %v145_v28 }
 0x2a5   :  { %v149_v30 = vsel %vm65_vm1, %v148_v29, 0.0 }
 0x2a6   :  { %150 = vadd.xlane.f32.xlu1 %v149_v30  ;;  %v944_v30 = vld [vmem:[#allocation2 + $0x8] sm:$0xf] }
 0x319   :  { %v151_v31 = vpop.xlane.xlu1 %150 }
 0x31a   :  { %v152_v32 = vadd.f32 1e-24, %v151_v31 }
 0x31c   :  { %2017 = vrsqrt.f32 %v152_v32  ;;  %vm159_vm11 = vweird.f32 %v152_v32 }
 0x322   :  { %v2018_v33 = vpop.eup %2017 }
 0x323   :  { %v154_v34 = vmul.f32 %v2018_v33, %v152_v32  ;;  %vm160_vm10 = vweird.f32 %v2018_v33  ;;  %v952_v32 = vld.sshfl [vmem:[#allocation1] sm:$0xff pattern:$0x75316420] }
 0x324   :  { %vm161_vm12 = vmor %vm159_vm11, %vm160_vm10  ;;  %vm685_vm10 = vcmask 883712   ;;  %vm593_vm11 = vcmask 891904  }
 0x325   :  { %v155_v35 = vmul.f32 %v2018_v33, %v154_v34 }
 0x327   :  { %v156_v36 = vmul.f32 0.5, %v155_v35  ;;  %v953_v35 = vld.sshfl [vmem:[#allocation1 + $0x8] sm:$0xff pattern:$0x75316420] }
 0x329   :  { %v157_v37 = vsub.f32 1.5, %v156_v36  ;;  %v2254_v36 = vld [vmem:[#allocation2 + $0xc] sm:$0xff] }
 0x32a   :  { %1052 = vst [vmem:[#allocation1] ss:$2 sm:$0xff] %v2254_v36 }
 0x32b   :  { %v158_v38 = vmul.f32 %v2018_v33, %v157_v37 }
 0x32d   :  { %v162_v39 = vsel %vm161_vm12, %v2018_v33, %v158_v38  ;;  %vm777_vm12 = vcmask 752640  }
 0x32e   :  { %v163_v40 = vmul.f32 %v162_v39, %v145_v28  ;;  %v852_v28 = vld [vmem:[#allocation2 + $0x8] sm:$0xf] }
 0x32f   :  { %859 = vst [vmem:[#allocation1 + $0x10] ss:$2 sm:$0xff] %v852_v28 }
 0x330   :  { %1878 = vmatmul.msk.f32.vlgmr.msra.gmra.mxu3 %vm81_vm2, %v163_v40  ;;  %vm1821_vm2 = vcmask 0  }
 0x331   :  { %v1055_v45 = vld.sshfl [vmem:[#allocation1] sm:$0xff pattern:$0x75316420] }
 0x336   :  { %v2250_v29 = vld.sshfl [vmem:[#allocation1 + $0x10] sm:$0xff pattern:$0x75316420] }
 0x337   :  { %951 = vst [vmem:[#allocation1 + $0x10] ss:$2 sm:$0xff] %v944_v30 }
 0x33e   :  { %v954_v31 = vld.sshfl [vmem:[#allocation1 + $0x10] sm:$0xff pattern:$0x75316420] }
 0x33f   :  { %959 = vrot.lane.b32.xlu0 %v954_v31, %s2135_s12  ;;  %1054 = vst [vmem:[#allocation1 + $0x10] ss:$2 sm:$0xff] %v1049_v43 }
 0x346   :  { %v1057_v51 = vld.sshfl [vmem:[#allocation1 + $0x10] sm:$0xff pattern:$0x75316420] }
 0x347   :  { %955 = vrot.lane.b32.xlu0 %v952_v32, %s2135_s12  ;;  %1134 = vst [vmem:[#allocation1 + $0x10] ss:$2 sm:$0xff] %v1049_v43 }
 0x3b3   :  { %v184_v46 = vpop.f32.mrf.mxu3 }
 0x3b4   :  { %v187_v47 = vmul.f32 %v184_v46, %v184_v46 }
 0x3b6   :  { %v188_v48 = vsel %vm109_vm6, %v187_v47, 0.0  ;;  %v1056_v47 = vld.sshfl [vmem:[#allocation1 + $0x8] sm:$0xff pattern:$0x75316420] }
 0x3b7   :  { %189 = vadd.xlane.f32.xlu1 %v188_v48  ;;  %1132 = vst [vmem:[#allocation1] ss:$2 sm:$0xff] %v2254_v36 }
 0x3be   :  { %v2267_v52 = vld.sshfl [vmem:[#allocation1] sm:$0xff pattern:$0x75316420]  ;;  %v2269_v53 = vld.sshfl [vmem:[#allocation1 + $0x8] sm:$0xff pattern:$0x75316420] }
 0x3bf   :  { %1208 = vst [vmem:[#allocation1] ss:$2 sm:$0xff] %v2254_v36 }
 0x3c6   :  { %v1211_v55 = vld.sshfl [vmem:[#allocation1] sm:$0xff pattern:$0x75316420] }
 0x3d0   :  { %495 = vrot.lane.b32.xlu1 %v492_v3, %s2130_s3 }
 0x3d8   :  { %591 = vrot.lane.b32.xlu1 %v586_v22, %s2132_s9 }
 0x3e0   :  { %587 = vrot.lane.b32.xlu1 %v584_v9, %s2132_s9 }
 0x3e8   :  { %683 = vrot.lane.b32.xlu1 %v678_v26, %s2131_s8 }
 0x42a   :  { %v190_v56 = vpop.xlane.xlu1 %189 }
 0x42b   :  { %v191_v57 = vadd.f32 1e-24, %v190_v56  ;;  %v2277_v56 = vld.sshfl [vmem:[#allocation1 + $0x8] sm:$0xff pattern:$0x75316420] }
 0x42c   :  { %1295 = vst [vmem:[#allocation1] ss:$2 sm:$0xff] %v2254_v36 }
 0x42d   :  { %2019 = vrsqrt.f32 %v191_v57  ;;  %vm198_vm0 = vweird.f32 %v191_v57 }
 0x433   :  { %v2020_v1 = vpop.eup %2019  ;;  %v1299_v60 = vld.sshfl [vmem:[#allocation1 + $0x8] sm:$0xff pattern:$0x75316420]  ;;  %v1298_v62 = vld.sshfl [vmem:[#allocation1] sm:$0xff pattern:$0x75316420] }
 0x434   :  { %v193_v2 = vmul.f32 %v2020_v1, %v191_v57  ;;  %vm199_vm15 = vweird.f32 %v2020_v1  ;;  %1382 = vst [vmem:[#allocation1] ss:$2 sm:$0xff] %v2254_v36 }
 0x435   :  { %vm200_vm1 = vmor %vm198_vm0, %vm199_vm15  ;;  %vm869_vm15 = vcmask 744448   ;;  %vm961_vm0 = vcmask 736256  }
 0x436   :  { %v194_v5 = vmul.f32 %v2020_v1, %v193_v2  ;;  %v1379_v2 = vld [vmem:[#allocation2 + $0x14] sm:$0xf] }
 0x438   :  { %v195_v6 = vmul.f32 0.5, %v194_v5 }
 0x43a   :  { %v196_v7 = vsub.f32 1.5, %v195_v6 }
 0x43b   :  { %v1385_v3 = vld.sshfl [vmem:[#allocation1] sm:$0xff pattern:$0x75316420]  ;;  %v1386_v4 = vld.sshfl [vmem:[#allocation1 + $0x8] sm:$0xff pattern:$0x75316420] }
 0x43c   :  { %v197_v8 = vmul.f32 %v2020_v1, %v196_v7  ;;  %1469 = vst [vmem:[#allocation1] ss:$2 sm:$0xff] %v2254_v36 }
 0x43e   :  { %v201_v11 = vsel %vm200_vm1, %v2020_v1, %v197_v8  ;;  %v2294_v1 = vpop.permute.xlu0 %497 }
 0x43f   :  { %v202_v12 = vmul.f32 %v201_v11, %v184_v46  ;;  %v1466_v11 = vld [vmem:[#allocation2 + $0x14] sm:$0xf] }
 0x441   :  { %v203_v13 = vmul.f32 %v202_v12, %v184_v46  ;;  %1820 = vst.msk [vmem:[#allocation6] sm:$0x1] %vm109_vm6, %v202_v12 }
 0x442   :  { %v496_v28 = vpop.permute.xlu1 %495  ;;  %1846 = dma.vmem_to_hbm [thread:$0]  %s1842_s25, 16, %s1844_s23, [#allocation7]  }
 0x443   :  { %v204_v14 = vsel %vm109_vm6, %v203_v13, 0.0  ;;  %v1472_v8 = vld.sshfl [vmem:[#allocation1] sm:$0xff pattern:$0x75316420] }
 0x444   :  { %205 = vadd.xlane.f32.xlu2 %v204_v14  ;;  %v1473_v9 = vld.sshfl [vmem:[#allocation1 + $0x8] sm:$0xff pattern:$0x75316420] }
 0x445   :  { %1556 = vst [vmem:[#allocation1] ss:$2 sm:$0xff] %v2254_v36 }
 0x446   :  { %v404_v6 = vpop.permute.xlu0 %403 }
 0x447   :  { %v410_v7 = vsel %vm409_vm8, %v404_v6, %v406_v58 }
 0x448   :  { %1891 = vmatpush.msk.msra.mxu1 %vm250_vm14, %v410_v7 }
 0x44a   :  { %v592_v31 = vpop.permute.xlu1 %591 }
 0x44c   :  { %v1559_v13 = vld.sshfl [vmem:[#allocation1] sm:$0xff pattern:$0x75316420]  ;;  %v1560_v15 = vld.sshfl [vmem:[#allocation1 + $0x8] sm:$0xff pattern:$0x75316420] }
 0x44d   :  { %1643 = vst [vmem:[#allocation1] ss:$2 sm:$0xff] %v2254_v36 }
 0x44e   :  { %v500_v12 = vpop.permute.xlu0 %499 }
 0x44f   :  { %v2308_v14 = vsel %vm501_vm9, %v2294_v1, %v500_v12 }
 0x454   :  { %v1647_v19 = vld.sshfl [vmem:[#allocation1 + $0x8] sm:$0xff pattern:$0x75316420]  ;;  %v1646_v22 = vld.sshfl [vmem:[#allocation1] sm:$0xff pattern:$0x75316420] }
 0x455   :  { %1730 = vst [vmem:[#allocation1] ss:$2 sm:$0xff] %v2254_v36  ;;  %v588_v36 = vpop.permute.xlu1 %587 }
 0x45c   :  { %407 = vrot.lane.b32.xlu2 %v402_v63, %s2129_s1 }
 0x464   :  { %589 = vrot.lane.b32.xlu2 %v585_v10, %s2132_s9 }
 0x46c   :  { %681 = vrot.lane.b32.xlu2 %v677_v18, %s2131_s8 }
 0x474   :  { %773 = vrot.lane.b32.xlu2 %v769_v21, %s2134_s11  ;;  %v1640_v21 = vld [vmem:[#allocation2 + $0x14] sm:$0xf] }
 0x47c   :  { %865 = vrot.lane.b32.xlu2 %v861_v25, %s2133_s10  ;;  %v1727_v25 = vld [vmem:[#allocation2 + $0x14] sm:$0xf] }
 0x4b7   :  { %v206_v33 = vpop.xlane.xlu2 %205 }
 0x4b8   :  { %2021 = vrcp.f32 %v206_v33  ;;  %1822 = vst.msk [vmem:[#allocation8] sm:$0x1] %vm1821_vm2, %v206_v33  ;;  %v218_v39 = vand.u32 2147483648, %v206_v33  ;;  %v216_v41 = vand.u32 2147483647, %v206_v33  ;;  %vm212_vm4 = vweird.f32 %v206_v33 }
 0x4b9   :  { %1857 = dma.vmem_to_hbm [thread:$0]  %s1853_s30, 16, %s1855_s28, [#allocation7]  }
 0x4ba   :  { %v219_v44 = vor.u32 1.1754944e-38, %v218_v39  ;;  %vm217_vm6 = vcmp.eq.f32.partialorder %v216_v41, 8.507059e+37  ;;  %v684_v39 = vpop.permute.xlu1 %683 }
 0x4be   :  { %v2022_v34 = vpop.eup %2021 }
 0x4bf   :  { %v208_v37 = vmul.f32 %v2022_v34, %v206_v33  ;;  %vm213_vm3 = vweird.f32 %v2022_v34  ;;  %v2284_v57 = vpop.permute.xlu2 %407 }
 0x4c0   :  { %vm214_vm5 = vmor %vm212_vm4, %vm213_vm3  ;;  %v411_v61 = vsel %vm409_vm8, %v406_v58, %v2284_v57 }
 0x4c1   :  { %v209_v38 = vsub.f32 1.0, %v208_v37  ;;  %1893 = vmatpush.msk.msra.mxu3 %vm250_vm14, %v411_v61 }
 0x4c3   :  { %v210_v40 = vmul.f32 %v2022_v34, %v209_v38  ;;  %v1734_v38 = vld.sshfl [vmem:[#allocation1 + $0x8] sm:$0xff pattern:$0x75316420] }
 0x4c5   :  { %v211_v42 = vadd.f32 %v2022_v34, %v210_v40 }
 0x4c7   :  { %v215_v46 = vsel %vm214_vm5, %v2022_v34, %v211_v42  ;;  %v590_v18 = vpop.permute.xlu2 %589 }
 0x4c8   :  { %v220_v48 = vsel %vm217_vm6, %v219_v44, %v215_v46  ;;  %v502_v44 = vsel %vm501_vm9, %v496_v28, %v2294_v1 }
 0x4c9   :  { %v222_v49 = vperm.slane %v220_v48, 0  ;;  %v595_v48 = vsel %vm593_vm11, %v590_v18, %v592_v31 }
 0x4cb   :  { %v2259_v50 = vmul.f32 %v222_v49, %v2190_v0  ;;  %v2275_v0 = vld.sshfl [vmem:[#allocation1 + $0x10] sm:$0xff pattern:$0x75316420] }
 0x4cc   :  { %1210 = vst [vmem:[#allocation1 + $0x10] ss:$2 sm:$0xff] %v1205_v54 }
 0x4cd   :  { %669 = vrot.lane.b32.xlu0 %v2259_v50, %s2131_s8  ;;  %393 = vrot.lane.b32.xlu2 %v2259_v50, %s2136_s13 }
 0x4ce   :  { %228 = vrot.lane.b32.xlu1 %v2259_v50, %s2137_s14  ;;  %1886 = vmatmul.msk.f32.vlgmr.msrb.gmra.mxu3 %vm247_vm7, %v2259_v50 }
 0x4cf   :  { %1901 = vmatpush.msk.msrb.mxu3 %vm250_vm14, %v500_v12  ;;  %v682_v23 = vpop.permute.xlu2 %681 }
 0x4d3   :  { %v1213_v63 = vld.sshfl [vmem:[#allocation1 + $0x10] sm:$0xff pattern:$0x75316420] }
 0x4d4   :  { %1297 = vst [vmem:[#allocation1 + $0x10] ss:$2 sm:$0xff] %v1292_v59 }
 0x4d5   :  { %853 = vrot.lane.b32.xlu0 %v2259_v50, %s2138_s15  ;;  %577 = vrot.lane.b32.xlu2 %v2259_v50, %s2139_s16 }
 0x4d6   :  { %775 = vrot.lane.b32.xlu1 %v770_v27, %s2134_s11 }
 0x4d7   :  { %v774_v26 = vpop.permute.xlu2 %773 }
 0x4db   :  { %v1300_v5 = vld.sshfl [vmem:[#allocation1 + $0x10] sm:$0xff pattern:$0x75316420] }
 0x4dc   :  { %1384 = vst [vmem:[#allocation1 + $0x10] ss:$2 sm:$0xff] %v1379_v2 }
 0x4dd   :  { %771 = vrot.lane.b32.xlu2 %v2236_v20, %s2134_s11  ;;  %1062 = vrot.lane.b32.xlu0 %v1057_v51, %s2128_s0 }
 0x4de   :  { %485 = vrot.lane.b32.xlu1 %v2259_v50, %s2140_s17 }
 0x4df   :  { %v2326_v30 = vpop.permute.xlu2 %865 }
 0x4e3   :  { %v1387_v10 = vld.sshfl [vmem:[#allocation1 + $0x10] sm:$0xff pattern:$0x75316420] }
 0x4e4   :  { %1471 = vst [vmem:[#allocation1 + $0x10] ss:$2 sm:$0xff] %v1466_v11 }
 0x4e5   :  { %867 = vrot.lane.b32.xlu2 %v2250_v29, %s2133_s10  ;;  %1303 = vrot.lane.b32.xlu0 %v1299_v60, %s2130_s3  ;;  %v680_v29 = vpop.permute.xlu0 %679 }
 0x4e6   :  { %957 = vrot.lane.b32.xlu1 %v953_v35, %s2135_s12  ;;  %v686_v33 = vsel %vm685_vm10, %v680_v29, %v682_v23  ;;  %v1733_v35 = vld.sshfl [vmem:[#allocation1] sm:$0xff pattern:$0x75316420] }
 0x4eb   :  { %v1474_v16 = vld.sshfl [vmem:[#allocation1 + $0x10] sm:$0xff pattern:$0x75316420] }
 0x4ec   :  { %1558 = vst [vmem:[#allocation1 + $0x10] ss:$2 sm:$0xff] %v1553_v17 }
 0x4ed   :  { %1058 = vrot.lane.b32.xlu2 %v1055_v45, %s2128_s0  ;;  %1301 = vrot.lane.b32.xlu0 %v1298_v62, %s2130_s3  ;;  %v864_v32 = vpop.permute.xlu0 %863 }
 0x4ee   :  { %1060 = vrot.lane.b32.xlu1 %v1056_v47, %s2128_s0  ;;  %v594_v47 = vsel %vm593_vm11, %v588_v36, %v590_v18  ;;  %v870_v61 = vsel %vm869_vm15, %v864_v32, %v2326_v30 }
 0x4f3   :  { %v1561_v20 = vld.sshfl [vmem:[#allocation1 + $0x10] sm:$0xff pattern:$0x75316420] }
 0x4f4   :  { %1645 = vst [vmem:[#allocation1 + $0x10] ss:$2 sm:$0xff] %v1640_v21 }
 0x4f5   :  { %1392 = vrot.lane.b32.xlu0 %v1387_v10, %s2132_s9  ;;  %1214 = vrot.lane.b32.xlu2 %v1211_v55, %s2129_s1  ;;  %v2339_v37 = vpop.permute.xlu0 %959  ;;  %v687_v55 = vsel %vm685_vm10, %v682_v23, %v684_v39 }
 0x4f6   :  { %761 = vrot.lane.b32.xlu1 %v2259_v50, %s2141_s18 }
 0x4fb   :  { %v1648_v24 = vld.sshfl [vmem:[#allocation1 + $0x10] sm:$0xff pattern:$0x75316420] }
 0x4fc   :  { %1732 = vst [vmem:[#allocation1 + $0x10] ss:$2 sm:$0xff] %v1727_v25 }
 0x4fd   :  { %1562 = vrot.lane.b32.xlu0 %v1559_v13, %s2134_s11  ;;  %1305 = vrot.lane.b32.xlu2 %v1300_v5, %s2130_s3  ;;  %v956_v40 = vpop.permute.xlu0 %955  ;;  %v224_v13 = vld [vmem:[%s2564_s2] sm:$0xff]  ;;  %s2147_s3 = smov 384  }
 0x4fe   :  { %945 = vrot.lane.b32.xlu1 %v2259_v50, %s2142_s19 }
 0x503   :  { %v1735_v27 = vld.sshfl [vmem:[#allocation1 + $0x10] sm:$0xff pattern:$0x75316420] }
 0x505   :  { %1651 = vrot.lane.b32.xlu0 %v1647_v19, %s2133_s10  ;;  %1388 = vrot.lane.b32.xlu2 %v1385_v3, %s2132_s9 }
 0x506   :  { %1216 = vrot.lane.b32.xlu1 %v2277_v56, %s2129_s1 }
 0x50d   :  { %1649 = vrot.lane.b32.xlu0 %v1646_v22, %s2133_s10  ;;  %1477 = vrot.lane.b32.xlu2 %v1473_v9, %s2131_s8 }
 0x50e   :  { %1218 = vrot.lane.b32.xlu1 %v1213_v63, %s2129_s1  ;;  %s1829_s1 = sshll.u32 %s2566_s4, 4  ;;  %s1830_s1 = int_to_ptr.hbm [resolvable:$true] %s1829_s1 }
 0x515   :  { %1740 = vrot.lane.b32.xlu0 %v1735_v27, %s2135_s12  ;;  %1564 = vrot.lane.b32.xlu2 %v1560_v15, %s2134_s11 }
 0x516   :  { %1390 = vrot.lane.b32.xlu1 %v1386_v4, %s2132_s9 }
 0x51d   :  { %1653 = vrot.lane.b32.xlu2 %v1648_v24, %s2133_s10 }
 0x51e   :  { %1479 = vrot.lane.b32.xlu1 %v1474_v16, %s2131_s8 }
 0x525   :  { %1736 = vrot.lane.b32.xlu2 %v1733_v35, %s2135_s12 }
 0x526   :  { %1475 = vrot.lane.b32.xlu1 %v1472_v8, %s2131_s8  ;;  %s2148_s8 = smov 24  }
 0x527   :  { %v2332_v34 = vpop.permute.xlu2 %393 }
 0x528   :  { %1894 = vmatmul.msk.f32.vlgmr.msra.gmra.mxu3 %vm247_vm7, %v2332_v34 }
 0x529   :  { %1909 = vmatpush.msk.msra.mxu3 %vm250_vm14, %v686_v33 }
 0x52e   :  { %1566 = vrot.lane.b32.xlu1 %v1561_v20, %s2134_s11 }
 0x52f   :  { %v2342_v41 = vpop.permute.xlu2 %577 }
 0x536   :  { %1738 = vrot.lane.b32.xlu1 %v1734_v38, %s2135_s12 }
 0x537   :  { %v772_v43 = vpop.permute.xlu2 %771 }
 0x538   :  { %v778_v56 = vsel %vm777_vm12, %v772_v43, %v774_v26 }
 0x53f   :  { %v2352_v45 = vpop.permute.xlu0 %669  ;;  %v868_v49 = vpop.permute.xlu2 %867 }
 0x540   :  { %v2344_v42 = vpop.permute.xlu1 %228  ;;  %v871_v62 = vsel %vm869_vm15, %v2326_v30, %v868_v49 }
 0x541   :  { %1880 = vmatmul.msk.f32.vlgmr.msrb.gmra.mxu0 %vm247_vm7, %v2344_v42  ;;  %1882 = vmatmul.msk.f32.vlgmr.msrb.gmra.mxu2 %vm247_vm7, %v2344_v42 }
 0x542   :  { %1884 = vmatmul.msk.f32.vlgmr.msrb.gmra.mxu1 %vm247_vm7, %v2344_v42  ;;  %1895 = vmatpush.msk.msrb.mxu0 %vm250_vm14, %v2284_v57 }
 0x543   :  { %1897 = vmatpush.msk.msrb.mxu2 %vm250_vm14, %v502_v44  ;;  %1899 = vmatpush.msk.msrb.mxu1 %vm250_vm14, %v2308_v14  ;;  %v2143_v14 = vmov 0  }
 0x544   :  { %2011 = vset.pattern.permute.xlu2 %v2143_v14  ;;  %2012 = vset.pattern.permute.xlu0 %v2143_v14 }
 0x545   :  { %1037 = vperm.xlu2 %2011, %v224_v13  }
 0x547   :  { %v2372_v51 = vpop.permute.xlu0 %853  ;;  %v1059_v58 = vpop.permute.xlu2 %1058 }
 0x548   :  { %v776_v46 = vpop.permute.xlu1 %775 }
 0x549   :  { %1888 = vmatmul.msk.f32.vlgmr.msra.gmra.mxu0 %vm247_vm7, %v2259_v50  ;;  %1890 = vmatmul.msk.f32.vlgmr.msra.gmra.mxu2 %vm247_vm7, %v2259_v50  ;;  %v779_v57 = vsel %vm777_vm12, %v774_v26, %v776_v46 }
 0x54a   :  { %1892 = vmatmul.msk.f32.vlgmr.msra.gmra.mxu1 %vm247_vm7, %v2332_v34  ;;  %1903 = vmatpush.msk.msra.mxu0 %vm250_vm14, %v594_v47 }
 0x54b   :  { %1905 = vmatpush.msk.msra.mxu2 %vm250_vm14, %v595_v48  ;;  %1907 = vmatpush.msk.msra.mxu1 %vm250_vm14, %v592_v31 }
 0x54f   :  { %v1063_v59 = vpop.permute.xlu0 %1062  ;;  %v1215_v63 = vpop.permute.xlu2 %1214 }
 0x550   :  { %v2374_v54 = vpop.permute.xlu1 %485 }
 0x551   :  { %1896 = vmatmul.msk.f32.vlgmr.msrb.gmra.mxu0 %vm247_vm7, %v2332_v34  ;;  %1898 = vmatmul.msk.f32.vlgmr.msrb.gmra.mxu2 %vm247_vm7, %v2374_v54  ;;  %v348_v44 = vpop.f32.mrf.mxu3 }
 0x552   :  { %1900 = vmatmul.msk.f32.vlgmr.msrb.gmra.mxu1 %vm247_vm7, %v2374_v54  ;;  %1902 = vmatmul.msk.f32.vlgmr.msrb.gmra.mxu3 %vm247_vm7, %v2374_v54 }
 0x553   :  { %1911 = vmatpush.msk.msrb.mxu0 %vm250_vm14, %v687_v55  ;;  %1913 = vmatpush.msk.msrb.mxu2 %vm250_vm14, %v684_v39 }
 0x554   :  { %1915 = vmatpush.msk.msrb.mxu1 %vm250_vm14, %v778_v56  ;;  %1917 = vmatpush.msk.msrb.mxu3 %vm250_vm14, %v779_v57 }
 0x557   :  { %v1304_v1 = vpop.permute.xlu0 %1303  ;;  %v1306_v5 = vpop.permute.xlu2 %1305 }
 0x558   :  { %v958_v60 = vpop.permute.xlu1 %957 }
 0x559   :  { %1904 = vmatmul.msk.f32.vlgmr.msra.gmra.mxu0 %vm247_vm7, %v2342_v41  ;;  %1906 = vmatmul.msk.f32.vlgmr.msra.gmra.mxu2 %vm247_vm7, %v2342_v41  ;;  %v962_v3 = vsel %vm961_vm0, %v956_v40, %v958_v60  ;;  %v963_v4 = vsel %vm961_vm0, %v958_v60, %v2339_v37 }
 0x55a   :  { %1908 = vmatmul.msk.f32.vlgmr.msra.gmra.mxu1 %vm247_vm7, %v2342_v41  ;;  %1910 = vmatmul.msk.f32.vlgmr.msra.gmra.mxu3 %vm247_vm7, %v2352_v45 }
 0x55b   :  { %1919 = vmatpush.msk.msra.mxu0 %vm250_vm14, %v776_v46  ;;  %1921 = vmatpush.msk.msra.mxu2 %vm250_vm14, %v870_v61 }
 0x55c   :  { %1923 = vmatpush.msk.msra.mxu1 %vm250_vm14, %v871_v62  ;;  %1925 = vmatpush.msk.msra.mxu3 %vm250_vm14, %v868_v49 }
 0x55f   :  { %v1302_v6 = vpop.permute.xlu0 %1301  ;;  %v1389_v10 = vpop.permute.xlu2 %1388 }
 0x560   :  { %v1061_v2 = vpop.permute.xlu1 %1060  ;;  %v1307_v16 = vsel %vm501_vm9, %v1302_v6, %v1304_v1 }
 0x561   :  { %1912 = vmatmul.msk.f32.vlgmr.msrb.gmra.mxu0 %vm247_vm7, %v2352_v45  ;;  %1914 = vmatmul.msk.f32.vlgmr.msrb.gmra.mxu2 %vm247_vm7, %v2352_v45  ;;  %v1064_v8 = vsel %vm244_vm13, %v1059_v58, %v1061_v2  ;;  %v1065_v9 = vsel %vm244_vm13, %v1061_v2, %v1063_v59  ;;  %vm1045_vm13 = vcmask 261120  }
 0x562   :  { %1927 = vmatpush.msk.msrb.mxu0 %vm250_vm14, %v962_v3  ;;  %1929 = vmatpush.msk.msrb.mxu2 %vm250_vm14, %v963_v4 }
 0x567   :  { %v1393_v12 = vpop.permute.xlu0 %1392 }
 0x568   :  { %v2416_v7 = vpop.permute.xlu1 %761 }
 0x569   :  { %1916 = vmatmul.msk.f32.vlgmr.msrb.gmra.mxu1 %vm247_vm7, %v2416_v7  ;;  %1918 = vmatmul.msk.f32.vlgmr.msrb.gmra.mxu3 %vm247_vm7, %v2416_v7 }
 0x56a   :  { %1920 = vmatmul.msk.f32.vlgmr.msra.gmra.mxu0 %vm247_vm7, %v2416_v7  ;;  %1922 = vmatmul.msk.f32.vlgmr.msra.gmra.mxu2 %vm247_vm7, %v2372_v51 }
 0x56b   :  { %1931 = vmatpush.msk.msrb.mxu1 %vm250_vm14, %v2339_v37  ;;  %1933 = vmatpush.msk.msrb.mxu3 %vm250_vm14, %v1064_v8 }
 0x56c   :  { %1935 = vmatpush.msk.msra.mxu0 %vm250_vm14, %v1065_v9  ;;  %1937 = vmatpush.msk.msra.mxu2 %vm250_vm14, %v1063_v59 }
 0x570   :  { %v2433_v11 = vpop.permute.xlu1 %945 }
 0x571   :  { %1924 = vmatmul.msk.f32.vlgmr.msra.gmra.mxu1 %vm247_vm7, %v2372_v51  ;;  %1926 = vmatmul.msk.f32.vlgmr.msra.gmra.mxu3 %vm247_vm7, %v2372_v51 }
 0x572   :  { %1928 = vmatmul.msk.f32.vlgmr.msrb.gmra.mxu0 %vm247_vm7, %v2433_v11  ;;  %1930 = vmatmul.msk.f32.vlgmr.msrb.gmra.mxu2 %vm247_vm7, %v2433_v11 }
 0x573   :  { %1943 = vmatpush.msk.msrb.mxu0 %vm250_vm14, %v2275_v0  ;;  %1939 = vmatpush.msk.msra.mxu1 %vm250_vm14, %v2267_v52  ;;  %v1308_v0 = vsel %vm501_vm9, %v1304_v1, %v1306_v5  ;;  %v1478_v52 = vpop.permute.xlu2 %1477 }
 0x574   :  { %1941 = vmatpush.msk.msra.mxu3 %vm250_vm14, %v2269_v53  ;;  %v1563_v53 = vpop.permute.xlu0 %1562 }
 0x578   :  { %v1217_v15 = vpop.permute.xlu1 %1216 }
 0x579   :  { %v1220_v17 = vsel %vm409_vm8, %v1215_v63, %v1217_v15  ;;  %1932 = vmatmul.msk.f32.vlgmr.msrb.gmra.mxu1 %vm247_vm7, %v2433_v11  ;;  %1934 = vmatmul.msk.f32.vlgmr.msrb.gmra.mxu3 %vm247_vm7, %v2344_v42 }
 0x57a   :  { %1936 = vmatmul.msk.f32.vlgmr.msra.gmra.mxu0 %vm247_vm7, %v2344_v42  ;;  %1938 = vmatmul.msk.f32.vlgmr.msra.gmra.mxu2 %vm247_vm7, %v2344_v42 }
 0x57b   :  { %1945 = vmatpush.msk.msrb.mxu2 %vm250_vm14, %v1220_v17  ;;  %1951 = vmatpush.msk.msra.mxu0 %vm250_vm14, %v1307_v16  ;;  %v1565_v20 = vpop.permute.xlu2 %1564 }
 0x57c   :  { %v1652_v21 = vpop.permute.xlu0 %1651 }
 0x57d   :  { %1953 = vmatpush.msk.msra.mxu2 %vm250_vm14, %v1308_v0 }
 0x580   :  { %v1219_v18 = vpop.permute.xlu1 %1218 }
 0x581   :  { %v1221_v19 = vsel %vm409_vm8, %v1217_v15, %v1219_v18  ;;  %1940 = vmatmul.msk.f32.vlgmr.msra.gmra.mxu1 %vm247_vm7, %v2259_v50  ;;  %1942 = vmatmul.msk.f32.vlgmr.msra.gmra.mxu3 %vm247_vm7, %v2259_v50 }
 0x582   :  { %1944 = vmatmul.msk.f32.vlgmr.msrb.gmra.mxu0 %vm247_vm7, %v2259_v50  ;;  %1946 = vmatmul.msk.f32.vlgmr.msrb.gmra.mxu2 %vm247_vm7, %v2332_v34  ;;  %v1568_v50 = vsel %vm777_vm12, %v1563_v53, %v1565_v20 }
 0x583   :  { %1949 = vmatpush.msk.msrb.mxu3 %vm250_vm14, %v1219_v18  ;;  %1947 = vmatpush.msk.msrb.mxu1 %vm250_vm14, %v1221_v19  ;;  %v1654_v25 = vpop.permute.xlu2 %1653 }
 0x584   :  { %1961 = vmatpush.msk.msrb.mxu2 %vm250_vm14, %v1393_v12  ;;  %v1650_v26 = vpop.permute.xlu0 %1649  ;;  %v1656_v29 = vsel %vm869_vm15, %v1652_v21, %v1654_v25 }
 0x585   :  { %1955 = vmatpush.msk.msra.mxu1 %vm250_vm14, %v1306_v5  ;;  %v1655_v30 = vsel %vm869_vm15, %v1650_v26, %v1652_v21 }
 0x588   :  { %v1391_v22 = vpop.permute.xlu1 %1390 }
 0x589   :  { %v1394_v23 = vsel %vm593_vm11, %v1389_v10, %v1391_v22  ;;  %v1395_v24 = vsel %vm593_vm11, %v1391_v22, %v1393_v12  ;;  %1948 = vmatmul.msk.f32.vlgmr.msrb.gmra.mxu1 %vm247_vm7, %v2332_v34  ;;  %1950 = vmatmul.msk.f32.vlgmr.msrb.gmra.mxu3 %vm247_vm7, %v2332_v34 }
 0x58a   :  { %1952 = vmatmul.msk.f32.vlgmr.msra.gmra.mxu0 %vm247_vm7, %v2374_v54  ;;  %1954 = vmatmul.msk.f32.vlgmr.msra.gmra.mxu2 %vm247_vm7, %v2374_v54 }
 0x58b   :  { %1957 = vmatpush.msk.msra.mxu3 %vm250_vm14, %v1394_v23  ;;  %1959 = vmatpush.msk.msrb.mxu0 %vm250_vm14, %v1395_v24  ;;  %v1737_v36 = vpop.permute.xlu2 %1736 }
 0x58c   :  { %1969 = vmatpush.msk.msra.mxu2 %vm250_vm14, %v1568_v50  ;;  %v1741_v32 = vpop.permute.xlu0 %1740 }
 0x590   :  { %v1480_v27 = vpop.permute.xlu1 %1479 }
 0x591   :  { %v1482_v28 = vsel %vm685_vm10, %v1478_v52, %v1480_v27  ;;  %1956 = vmatmul.msk.f32.vlgmr.msra.gmra.mxu1 %vm247_vm7, %v2374_v54  ;;  %1958 = vmatmul.msk.f32.vlgmr.msra.gmra.mxu3 %vm247_vm7, %v2342_v41 }
 0x592   :  { %1960 = vmatmul.msk.f32.vlgmr.msrb.gmra.mxu0 %vm247_vm7, %v2342_v41  ;;  %1962 = vmatmul.msk.f32.vlgmr.msrb.gmra.mxu2 %vm247_vm7, %v2342_v41 }
 0x593   :  { %1967 = vmatpush.msk.msra.mxu0 %vm250_vm14, %v1480_v27  ;;  %1965 = vmatpush.msk.msrb.mxu3 %vm250_vm14, %v1482_v28 }
 0x594   :  { %1977 = vmatpush.msk.msrb.mxu2 %vm250_vm14, %v1656_v29 }
 0x595   :  { %1975 = vmatpush.msk.msrb.mxu0 %vm250_vm14, %v1655_v30 }
 0x598   :  { %v1476_v31 = vpop.permute.xlu1 %1475 }
 0x599   :  { %v1481_v33 = vsel %vm685_vm10, %v1476_v31, %v1478_v52  ;;  %1966 = vmatmul.msk.f32.vlgmr.msrb.gmra.mxu3 %vm247_vm7, %v2352_v45 }
 0x59a   :  { %1968 = vmatmul.msk.f32.vlgmr.msra.gmra.mxu0 %vm247_vm7, %v2352_v45  ;;  %1970 = vmatmul.msk.f32.vlgmr.msra.gmra.mxu2 %vm247_vm7, %v2416_v7 }
 0x59b   :  { %1963 = vmatpush.msk.msrb.mxu1 %vm250_vm14, %v1481_v33  ;;  %1985 = vmatpush.msk.msra.mxu2 %vm250_vm14, %v1741_v32 }
 0x59c   :  { %1964 = vmatmul.msk.f32.vlgmr.msrb.gmra.mxu1 %vm247_vm7, %v2352_v45 }
 0x59f   :  { %v2549_v18 = vpop.permute.xlu2 %1037 }
 0x5a0   :  { %v1567_v34 = vpop.permute.xlu1 %1566 }
 0x5a1   :  { %v1569_v35 = vsel %vm777_vm12, %v1565_v20, %v1567_v34  ;;  %1973 = vmatpush.msk.msra.mxu3 %vm250_vm14, %v1567_v34 }
 0x5a2   :  { %1976 = vmatmul.msk.f32.vlgmr.msrb.gmra.mxu0 %vm247_vm7, %v2372_v51  ;;  %1978 = vmatmul.msk.f32.vlgmr.msrb.gmra.mxu2 %vm247_vm7, %v2372_v51 }
 0x5a3   :  { %1971 = vmatpush.msk.msra.mxu1 %vm250_vm14, %v1569_v35  ;;  %1974 = vmatmul.msk.f32.vlgmr.msra.gmra.mxu3 %vm247_vm7, %v2416_v7 }
 0x5a4   :  { %1972 = vmatmul.msk.f32.vlgmr.msra.gmra.mxu1 %vm247_vm7, %v2416_v7 }
 0x5a5   :  { %1979 = vmatpush.msk.msrb.mxu1 %vm250_vm14, %v1654_v25 }
 0x5a8   :  { %v1739_v37 = vpop.permute.xlu1 %1738 }
 0x5a9   :  { %v1742_v38 = vsel %vm961_vm0, %v1737_v36, %v1739_v37  ;;  %v1743_v39 = vsel %vm961_vm0, %v1739_v37, %v1741_v32 }
 0x5aa   :  { %1986 = vmatmul.msk.f32.vlgmr.msra.gmra.mxu2 %vm247_vm7, %v2433_v11  ;;  %1981 = vmatpush.msk.msrb.mxu3 %vm250_vm14, %v1742_v38 }
 0x5ab   :  { %1983 = vmatpush.msk.msra.mxu0 %vm250_vm14, %v1743_v39  ;;  %1982 = vmatmul.msk.f32.vlgmr.msrb.gmra.mxu3 %vm247_vm7, %v2433_v11  ;;  %v457_v48 = vpop.f32.mrf.mxu3 }
 0x5ac   :  { %1980 = vmatmul.msk.f32.vlgmr.msrb.gmra.mxu1 %vm247_vm7, %v2372_v51  ;;  %1984 = vmatmul.msk.f32.vlgmr.msra.gmra.mxu0 %vm247_vm7, %v2433_v11 }
 0x5be   :  { %v274_v40 = vpop.f32.mrf.mxu0 }
 0x5bf   :  { %v314_v41 = vpop.f32.mrf.mxu1  ;;  %v349_v59 = vadd.f32 %v348_v44, %v274_v40 }
 0x5c4   :  { %v294_v42 = vpop.f32.mrf.mxu2 }
 0x5c6   :  { %v368_v43 = vpop.f32.mrf.mxu0 }
 0x5c7   :  { %v437_v45 = vpop.f32.mrf.mxu1  ;;  %v369_v60 = vadd.f32 %v368_v43, %v294_v42 }
 0x5c8   :  { %v480_v61 = vadd.f32 %v437_v45, %v349_v59 }
 0x5c9   :  { %v481_v3 = vadd.f32 %v457_v48, %v369_v60 }
 0x5cc   :  { %v388_v46 = vpop.f32.mrf.mxu2 }
 0x5cd   :  { %v389_v62 = vadd.f32 %v388_v46, %v314_v41 }
 0x5ce   :  { %v477_v47 = vpop.f32.mrf.mxu0 }
 0x5cf   :  { %v549_v49 = vpop.f32.mrf.mxu1  ;;  %v482_v5 = vadd.f32 %v477_v47, %v389_v62 }
 0x5d0   :  { %v573_v7 = vadd.f32 %v549_v49, %v481_v3 }
 0x5d4   :  { %v529_v51 = vpop.f32.mrf.mxu2 }
 0x5d5   :  { %v569_v55 = vpop.f32.mrf.mxu3  ;;  %v572_v63 = vadd.f32 %v529_v51, %v480_v61 }
 0x5d6   :  { %v621_v54 = vpop.f32.mrf.mxu0  ;;  %v574_v9 = vadd.f32 %v569_v55, %v482_v5 }
 0x5d7   :  { %v661_v57 = vpop.f32.mrf.mxu1  ;;  %v664_v8 = vadd.f32 %v621_v54, %v572_v63 }
 0x5d8   :  { %v666_v14 = vadd.f32 %v661_v57, %v574_v9 }
 0x5dc   :  { %v641_v56 = vpop.f32.mrf.mxu2 }
 0x5dd   :  { %v713_v1 = vpop.f32.mrf.mxu3  ;;  %v665_v10 = vadd.f32 %v641_v56, %v573_v7 }
 0x5de   :  { %v733_v58 = vpop.f32.mrf.mxu0  ;;  %v756_v11 = vadd.f32 %v713_v1, %v664_v8 }
 0x5df   :  { %v757_v16 = vadd.f32 %v733_v58, %v665_v10 }
 0x5e4   :  { %v753_v2 = vpop.f32.mrf.mxu2 }
 0x5e5   :  { %v758_v52 = vadd.f32 %v753_v2, %v666_v14 }
 0x5e6   :  { %v805_v4 = vpop.f32.mrf.mxu1 }
 0x5e7   :  { %v845_v6 = vpop.f32.mrf.mxu0  ;;  %v848_v12 = vadd.f32 %v805_v4, %v756_v11 }
 0x5e8   :  { %v850_v22 = vadd.f32 %v845_v6, %v758_v52 }
 0x5ec   :  { %v825_v13 = vpop.f32.mrf.mxu3 }
 0x5ed   :  { %v897_v15 = vpop.f32.mrf.mxu2  ;;  %v849_v19 = vadd.f32 %v825_v13, %v757_v16 }
 0x5ee   :  { %v940_v17 = vadd.f32 %v897_v15, %v848_v12  ;;  %v917_v0 = vpop.f32.mrf.mxu1 }
 0x5ef   :  { %v989_v53 = vpop.f32.mrf.mxu0  ;;  %v941_v23 = vadd.f32 %v917_v0, %v849_v19 }
 0x5f0   :  { %v1032_v20 = vadd.f32 %v989_v53, %v940_v17 }
 0x5f2   :  { %v1040_v21 = vadd.f32 %v2549_v18, %v1032_v20 }
 0x5f4   :  { %1043 = vst [vmem:[#allocation5] sm:$0xff] %v1040_v21  ;;  %v937_v24 = vpop.f32.mrf.mxu3 }
 0x5f5   :  { %v942_v50 = vadd.f32 %v937_v24, %v850_v22  ;;  %v1009_v25 = vpop.f32.mrf.mxu2 }
 0x5f6   :  { %v1033_v26 = vadd.f32 %v1009_v25, %v941_v23  ;;  %v1029_v27 = vpop.f32.mrf.mxu1 }
 0x5f7   :  { %v1034_v28 = vadd.f32 %v1029_v27, %v942_v50  ;;  %v1109_v29 = vpop.f32.mrf.mxu0 }
 0x5f8   :  { %v1041_v30 = vadd.f32 %v2549_v18, %v1033_v26 }
 0x5f9   :  { %v1042_v31 = vadd.f32 %v2549_v18, %v1034_v28 }
 0x5fa   :  { %1044 = vst [vmem:[#allocation5 + $0x8] sm:$0xff] %v1041_v30 }
 0x5fb   :  { %1046 = vst.msk [vmem:[#allocation5 + $0x10] sm:$0xff] %vm1045_vm13, %v1042_v31 }
 0x5fc   :  { %v1089_v32 = vpop.f32.mrf.mxu3 }
 0x5fd   :  { %v1129_v33 = vpop.f32.mrf.mxu2 }
 0x5fe   :  { %v1161_v34 = vpop.f32.mrf.mxu1 }
 0x5ff   :  { %v1201_v35 = vpop.f32.mrf.mxu0  ;;  %v1162_v56 = vadd.f32 %v1161_v34, %v1089_v32 }
 0x600   :  { %v1202_v49 = vadd.f32 %v1201_v35, %v1129_v33 }
 0x604   :  { %v1181_v36 = vpop.f32.mrf.mxu3 }
 0x605   :  { %v1245_v37 = vpop.f32.mrf.mxu2  ;;  %v1182_v47 = vadd.f32 %v1181_v36, %v1109_v29 }
 0x606   :  { %v1265_v38 = vpop.f32.mrf.mxu1  ;;  %v1288_v59 = vadd.f32 %v1245_v37, %v1162_v56 }
 0x607   :  { %v1332_v39 = vpop.f32.mrf.mxu0  ;;  %v1289_v51 = vadd.f32 %v1265_v38, %v1182_v47 }
 0x608   :  { %v1375_v2 = vadd.f32 %v1332_v39, %v1288_v59 }
 0x60c   :  { %v1285_v40 = vpop.f32.mrf.mxu3 }
 0x60d   :  { %v1352_v41 = vpop.f32.mrf.mxu2  ;;  %v1290_v54 = vadd.f32 %v1285_v40, %v1202_v49 }
 0x60e   :  { %v1372_v43 = vpop.f32.mrf.mxu1  ;;  %v1376_v58 = vadd.f32 %v1352_v41, %v1289_v51 }
 0x60f   :  { %v1439_v42 = vpop.f32.mrf.mxu0  ;;  %v1377_v60 = vadd.f32 %v1372_v43, %v1290_v54 }
 0x610   :  { %v1463_v63 = vadd.f32 %v1439_v42, %v1376_v58 }
 0x614   :  { %v1419_v44 = vpop.f32.mrf.mxu3 }
 0x615   :  { %v1459_v45 = vpop.f32.mrf.mxu2  ;;  %v1462_v4 = vadd.f32 %v1419_v44, %v1375_v2 }
 0x616   :  { %v1464_v1 = vadd.f32 %v1459_v45, %v1377_v60 }
 0x617   :  { %v1546_v46 = vpop.f32.mrf.mxu0 }
 0x618   :  { %v1551_v6 = vadd.f32 %v1546_v46, %v1464_v1 }
 0x619   :  { %v1506_v48 = vpop.f32.mrf.mxu1 }
 0x61a   :  { %v1549_v9 = vadd.f32 %v1506_v48, %v1462_v4 }
 0x61c   :  { %v1526_v55 = vpop.f32.mrf.mxu3 }
 0x61d   :  { %v1593_v57 = vpop.f32.mrf.mxu2  ;;  %v1550_v3 = vadd.f32 %v1526_v55, %v1463_v63 }
 0x61e   :  { %v1636_v12 = vadd.f32 %v1593_v57, %v1549_v9 }
 0x61f   :  { %v1680_v61 = vpop.f32.mrf.mxu0 }
 0x620   :  { %v1723_v0 = vadd.f32 %v1680_v61, %v1636_v12 }
 0x621   :  { %v1613_v62 = vpop.f32.mrf.mxu1 }
 0x622   :  { %v1637_v7 = vadd.f32 %v1613_v62, %v1550_v3 }
 0x625   :  { %v1700_v5 = vpop.f32.mrf.mxu2 }
 0x626   :  { %v1633_v8 = vpop.f32.mrf.mxu3  ;;  %v1724_v10 = vadd.f32 %v1700_v5, %v1637_v7 }
 0x627   :  { %v1638_v11 = vadd.f32 %v1633_v8, %v1551_v6 }
 0x629   :  { %v1720_v13 = vpop.f32.mrf.mxu1  ;;  %v1787_v14 = vpop.f32.mrf.mxu0 }
 0x62a   :  { %v1811_v15 = vadd.f32 %v1787_v14, %v1724_v10  ;;  %v1725_v16 = vadd.f32 %v1720_v13, %v1638_v11 }
 0x62c   :  { %v1814_v17 = vadd.f32 %v1811_v15, %v2549_v18 }
 0x62d   :  { %v1807_v52 = vpop.f32.mrf.mxu2 }
 0x62e   :  { %1818 = vst [vmem:[#allocation5 + $0x20] sm:$0xff] %v1814_v17  ;;  %v1812_v53 = vadd.f32 %v1807_v52, %v1725_v16  ;;  %v1767_v19 = vpop.f32.mrf.mxu3 }
 0x62f   :  { %v1810_v20 = vadd.f32 %v1767_v19, %v1723_v0 }
 0x630   :  { %v1815_v21 = vadd.f32 %v1812_v53, %v2549_v18 }
 0x631   :  { %v1813_v22 = vadd.f32 %v1810_v20, %v2549_v18 }
 0x632   :  { %1819 = vst.msk [vmem:[#allocation5 + $0x28] sm:$0xff] %vm1045_vm13, %v1815_v21 }
 0x633   :  { %1817 = vst [vmem:[#allocation5 + $0x18] sm:$0xff] %v1813_v22 }
 0x634   :  { %1835 = dma.vmem_to_hbm [thread:$0]  %s1828_s6, 768, %s1830_s1, [#allocation4], %s2147_s3, %s2147_s3, %s2148_s8  }
 0x635   :  { %2121 = dma.done.wait [#allocation4], 768  }
 0x636   :  { %2122 = vsyncadd [#allocation4], 4294966528 }
 0x637   :  { %2123 = dma.done.wait [#allocation7], 32  }
 0x638   :  { %2124 = vsyncadd [#allocation7], 4294967264 }
 0x639   :  { %1870 = vsyncpa [#allocation3], 1 }
 0x63a   :  { %1871 = vsyncpa [#allocation4], 1 }
 0x63b   :  { %1872 = vsyncpa [#allocation7], 1 }

</bundles_post_ra>
